<compile_context>
chip_gen: v6e
topology: v6e:2x2x1
jax: 0.10.0
libtpu: 0.0.40
codegen_flags: <defaults>
</compile_context>

<pallas_src>
import jax
import jax.numpy as jnp
from jax.experimental import pallas as pl
from jax.experimental.pallas import tpu as pltpu

INPUT_SIZE = 3 * 32 * 32   # 3072
HIDDEN1 = 128
HIDDEN2 = 64
NUM_CLASSES = 10
LANE = 128                 # TPU lane width: narrow dims are zero-padded up to this
DEFAULT_BLOCK_BATCH = 512  # batch tile; double-buffered x tile fits VMEM even on v7x


def _mlp_kernel(x_ref, w1_ref, b1_ref, w2_ref, b2_ref, w3_ref, b3_ref, o_ref):
    """Fused 3-layer MLP on one (TB, 3072) batch tile; weights are VMEM-resident.

    All matmuls accumulate in f32 on the MXU; bias-add + ReLU are VPU filler.
    Layer-2/3 widths are zero-padded to 128 so every store is lane-dense.
    """
    cdt = w1_ref.dtype  # compute dtype (f32 or bf16)

    # Layer 1: (TB, 3072) @ (3072, 128) -> (TB, 128)
    h1 = jnp.dot(x_ref[...], w1_ref[...], preferred_element_type=jnp.float32)
    h1 = jnp.maximum(h1 + b1_ref[...], 0.0)

    # Layer 2: (TB, 128) @ (128, 128) -> (TB, 128)   (cols 64..127 zero-padded)
    h2 = jnp.dot(h1.astype(cdt), w2_ref[...], preferred_element_type=jnp.float32)
    h2 = jnp.maximum(h2 + b2_ref[...], 0.0)

    # Layer 3: (TB, 128) @ (128, 128) -> (TB, 128)   (cols 10..127 zero-padded)
    o_ref[...] = (
        jnp.dot(h2.astype(cdt), w3_ref[...], preferred_element_type=jnp.float32)
        + b3_ref[...]
    )


def _round_up(n, m):
    return ((n + m - 1) // m) * m


def _pad_to(a, shape):
    pads = tuple((0, t - s) for s, t in zip(a.shape, shape))
    if all(p == (0, 0) for p in pads):
        return a
    return jnp.pad(a, pads)


def mlp_forward(x, params, *, compute_dtype=jnp.float32,
                block_batch=DEFAULT_BLOCK_BATCH):
    """x: (B, 3, 32, 32) float32 (NCHW, like PyTorch).  Returns (B, 10) logits."""
    w1, b1, w2, b2, w3, b3 = params
    batch = x.shape[0]

    # Same semantics as torch's x.view(-1, 3*32*32): row-major flatten per sample.
    x_flat = x.reshape(batch, INPUT_SIZE)

    # Batch tile: at least a sublane multiple (8); pad batch up to a tile multiple.
    tb = min(block_batch, _round_up(batch, 8))
    padded_batch = _round_up(batch, tb)
    x_flat = _pad_to(x_flat, (padded_batch, INPUT_SIZE)).astype(compute_dtype)

    # Zero-pad narrow layer widths to the 128-lane width (numerically exact).
    w1c = w1.astype(compute_dtype)                              # (3072, 128)
    b1c = b1.astype(jnp.float32)                                # (1, 128)
    w2p = _pad_to(w2, (HIDDEN1, LANE)).astype(compute_dtype)    # (128, 128)
    b2p = _pad_to(b2, (1, LANE)).astype(jnp.float32)            # (1, 128)
    w3p = _pad_to(w3, (LANE, LANE)).astype(compute_dtype)       # (128, 128)
    b3p = _pad_to(b3, (1, LANE)).astype(jnp.float32)            # (1, 128)

    grid = (padded_batch // tb,)

    # Weights/biases: full block, constant index map -> stay resident in VMEM.
    const = lambda arr: pl.BlockSpec(arr.shape, lambda i: (0,) * arr.ndim)

    out = pl.pallas_call(
        _mlp_kernel,
        out_shape=jax.ShapeDtypeStruct((padded_batch, LANE), jnp.float32),
        grid=grid,
        in_specs=[
            pl.BlockSpec((tb, INPUT_SIZE), lambda i: (i, 0)),   # x: pipelined tiles
            const(w1c), const(b1c),
            const(w2p), const(b2p),
            const(w3p), const(b3p),
        ],
        out_specs=pl.BlockSpec((tb, LANE), lambda i: (i, 0)),
        compiler_params=pltpu.CompilerParams(
            dimension_semantics=("parallel",),          # batch tiles are independent
            vmem_limit_bytes=32 * 1024 * 1024,          # fits the v7x 64 MiB VMEM
        ),
    )(x_flat, w1c, b1c, w2p, b2p, w3p, b3p)

    # Strip batch padding and the lane padding of the 10-class output.
    return out[:batch, :NUM_CLASSES]


def init_params(key):
    """Deterministic init mimicking nn.Linear default (U(-1/sqrt(fan_in), +1/sqrt(fan_in)))."""
    def linear(key, fan_in, fan_out):
        kw, kb = jax.random.split(key)
        bound = 1.0 / jnp.sqrt(jnp.float32(fan_in))
        # stored as (in, out): transpose of PyTorch's (out, in)
        w = jax.random.uniform(kw, (fan_in, fan_out), jnp.float32, -bound, bound)
        b = jax.random.uniform(kb, (1, fan_out), jnp.float32, -bound, bound)
        return w, b

    k1, k2, k3 = jax.random.split(key, 3)
    w1, b1 = linear(k1, INPUT_SIZE, HIDDEN1)
    w2, b2 = linear(k2, HIDDEN1, HIDDEN2)
    w3, b3 = linear(k3, HIDDEN2, NUM_CLASSES)
    return (w1, b1, w2, b2, w3, b3)


if __name__ == "__main__":
    key = jax.random.PRNGKey(0)
    k_param, k_x = jax.random.split(key)

    params = init_params(k_param)
    # Small batch of CIFAR-shaped inputs, NCHW like PyTorch.
    x = jax.random.normal(k_x, (2, 3, 32, 32), dtype=jnp.float32)

    # f32 path: must match the plain-JAX reference tightly.
    logits = mlp_forward(x, params)
    jax.block_until_ready(logits)

    w1, b1, w2, b2, w3, b3 = params
    xf = x.reshape(2, INPUT_SIZE)
    ref = jnp.maximum(xf @ w1 + b1, 0.0)
    ref = jnp.maximum(ref @ w2 + b2, 0.0)
    ref = ref @ w3 + b3
    assert logits.shape == (2, NUM_CLASSES)
    assert jnp.allclose(logits, ref, atol=1e-4, rtol=1e-4)

    # bf16-input / f32-accumulate path (recommended on v6e/v7x): loose check.
    logits_bf16 = mlp_forward(x, params, compute_dtype=jnp.bfloat16)
    jax.block_until_ready(logits_bf16)
    assert logits_bf16.shape == (2, NUM_CLASSES)
    assert bool(jnp.all(jnp.isfinite(logits_bf16)))
    assert jnp.allclose(logits_bf16, ref, atol=0.25, rtol=0.25)

    print("KERNEL_OK")
</pallas_src>

<mosaic_0001>
module attributes {stable_mosaic.version = 11 : i64} {
  func.func @_mlp_kernel(%arg0: i32, %arg1: memref<8x3072xf32, #tpu.memory_space<vmem>>, %arg2: memref<3072x128xf32, #tpu.memory_space<vmem>>, %arg3: memref<1x128xf32, #tpu.memory_space<vmem>>, %arg4: memref<128x128xf32, #tpu.memory_space<vmem>>, %arg5: memref<1x128xf32, #tpu.memory_space<vmem>>, %arg6: memref<128x128xf32, #tpu.memory_space<vmem>>, %arg7: memref<1x128xf32, #tpu.memory_space<vmem>>, %arg8: memref<8x128xf32, #tpu.memory_space<vmem>>) attributes {dimension_semantics = [#tpu.dimension_semantics<parallel>], iteration_bounds = array<i64: 1>, scalar_prefetch = 0 : i64, scratch_operands = 0 : i64, tpu.core_type = #tpu.core_type<tc>, window_params = [{transform_indices = @transform_0, window_bounds = array<i64: 8, 3072>}, {pipeline_mode = #tpu.pipeline_mode<synchronous>, transform_indices = @transform_1, window_bounds = array<i64: 3072, 128>}, {pipeline_mode = #tpu.pipeline_mode<synchronous>, transform_indices = @transform_2, window_bounds = array<i64: 1, 128>}, {pipeline_mode = #tpu.pipeline_mode<synchronous>, transform_indices = @transform_3, window_bounds = array<i64: 128, 128>}, {pipeline_mode = #tpu.pipeline_mode<synchronous>, transform_indices = @transform_4, window_bounds = array<i64: 1, 128>}, {pipeline_mode = #tpu.pipeline_mode<synchronous>, transform_indices = @transform_5, window_bounds = array<i64: 128, 128>}, {pipeline_mode = #tpu.pipeline_mode<synchronous>, transform_indices = @transform_6, window_bounds = array<i64: 1, 128>}, {transform_indices = @transform_7, window_bounds = array<i64: 8, 128>}]} {
    %c0 = arith.constant 0 : index
    %c0_0 = arith.constant 0 : index
    %0 = vector.load %arg1[%c0, %c0_0] : memref<8x3072xf32, #tpu.memory_space<vmem>>, vector<8x3072xf32>
    %c0_1 = arith.constant 0 : index
    %c0_2 = arith.constant 0 : index
    %1 = vector.load %arg2[%c0_1, %c0_2] : memref<3072x128xf32, #tpu.memory_space<vmem>>, vector<3072x128xf32>
    %cst = arith.constant dense<0.000000e+00> : vector<8x128xf32>
    %2 = tpu.matmul %0, %1, %cst {dimension_numbers = #tpu.dot_dimension_numbers<[1], [0], [0], [1], [0, 0, 1, 1], [], []>} : vector<8x3072xf32>, vector<3072x128xf32>, vector<8x128xf32> -> vector<8x128xf32>
    %c0_3 = arith.constant 0 : index
    %c0_4 = arith.constant 0 : index
    %3 = vector.load %arg3[%c0_3, %c0_4] : memref<1x128xf32, #tpu.memory_space<vmem>>, vector<1x128xf32>
    %4 = vector.broadcast %3 : vector<1x128xf32> to vector<8x128xf32>
    %5 = arith.addf %2, %4 : vector<8x128xf32>
    %cst_5 = arith.constant 0.000000e+00 : f32
    %6 = vector.broadcast %cst_5 : f32 to vector<8x128xf32>
    %7 = arith.maximumf %5, %6 : vector<8x128xf32>
    %c0_6 = arith.constant 0 : index
    %c0_7 = arith.constant 0 : index
    %8 = vector.load %arg4[%c0_6, %c0_7] : memref<128x128xf32, #tpu.memory_space<vmem>>, vector<128x128xf32>
    %cst_8 = arith.constant dense<0.000000e+00> : vector<8x128xf32>
    %9 = tpu.matmul %7, %8, %cst_8 {dimension_numbers = #tpu.dot_dimension_numbers<[1], [0], [0], [1], [0, 0, 1, 1], [], []>} : vector<8x128xf32>, vector<128x128xf32>, vector<8x128xf32> -> vector<8x128xf32>
    %c0_9 = arith.constant 0 : index
    %c0_10 = arith.constant 0 : index
    %10 = vector.load %arg5[%c0_9, %c0_10] : memref<1x128xf32, #tpu.memory_space<vmem>>, vector<1x128xf32>
    %11 = vector.broadcast %10 : vector<1x128xf32> to vector<8x128xf32>
    %12 = arith.addf %9, %11 : vector<8x128xf32>
    %cst_11 = arith.constant 0.000000e+00 : f32
    %13 = vector.broadcast %cst_11 : f32 to vector<8x128xf32>
    %14 = arith.maximumf %12, %13 : vector<8x128xf32>
    %c0_12 = arith.constant 0 : index
    %c0_13 = arith.constant 0 : index
    %15 = vector.load %arg6[%c0_12, %c0_13] : memref<128x128xf32, #tpu.memory_space<vmem>>, vector<128x128xf32>
    %cst_14 = arith.constant dense<0.000000e+00> : vector<8x128xf32>
    %16 = tpu.matmul %14, %15, %cst_14 {dimension_numbers = #tpu.dot_dimension_numbers<[1], [0], [0], [1], [0, 0, 1, 1], [], []>} : vector<8x128xf32>, vector<128x128xf32>, vector<8x128xf32> -> vector<8x128xf32>
    %c0_15 = arith.constant 0 : index
    %c0_16 = arith.constant 0 : index
    %17 = vector.load %arg7[%c0_15, %c0_16] : memref<1x128xf32, #tpu.memory_space<vmem>>, vector<1x128xf32>
    %18 = vector.broadcast %17 : vector<1x128xf32> to vector<8x128xf32>
    %19 = arith.addf %16, %18 : vector<8x128xf32>
    %c0_17 = arith.constant 0 : index
    %c0_18 = arith.constant 0 : index
    %20 = vector.load %arg8[%c0_17, %c0_18] : memref<8x128xf32, #tpu.memory_space<vmem>>, vector<8x128xf32>
    tpu.vector_store %arg8[%c0_17, %c0_18], %19 {strides = array<i32>} : memref<8x128xf32, #tpu.memory_space<vmem>>, vector<8x128xf32>,
    return
  }
  func.func @transform_0(%arg0: i32) -> (i32, i32) {
    %c0_i32 = arith.constant 0 : i32
    %c0_i32_0 = arith.constant 0 : i32
    return %arg0, %c0_i32 : i32, i32
  }
  func.func @transform_1(%arg0: i32) -> (i32, i32) {
    %c0_i32 = arith.constant 0 : i32
    %c0_i32_0 = arith.constant 0 : i32
    %c0_i32_1 = arith.constant 0 : i32
    return %c0_i32, %c0_i32_0 : i32, i32
  }
  func.func @transform_2(%arg0: i32) -> (i32, i32) {
    %c0_i32 = arith.constant 0 : i32
    %c0_i32_0 = arith.constant 0 : i32
    %c0_i32_1 = arith.constant 0 : i32
    return %c0_i32, %c0_i32_0 : i32, i32
  }
  func.func @transform_3(%arg0: i32) -> (i32, i32) {
    %c0_i32 = arith.constant 0 : i32
    %c0_i32_0 = arith.constant 0 : i32
    %c0_i32_1 = arith.constant 0 : i32
    return %c0_i32, %c0_i32_0 : i32, i32
  }
  func.func @transform_4(%arg0: i32) -> (i32, i32) {
    %c0_i32 = arith.constant 0 : i32
    %c0_i32_0 = arith.constant 0 : i32
    %c0_i32_1 = arith.constant 0 : i32
    return %c0_i32, %c0_i32_0 : i32, i32
  }
  func.func @transform_5(%arg0: i32) -> (i32, i32) {
    %c0_i32 = arith.constant 0 : i32
    %c0_i32_0 = arith.constant 0 : i32
    %c0_i32_1 = arith.constant 0 : i32
    return %c0_i32, %c0_i32_0 : i32, i32
  }
  func.func @transform_6(%arg0: i32) -> (i32, i32) {
    %c0_i32 = arith.constant 0 : i32
    %c0_i32_0 = arith.constant 0 : i32
    %c0_i32_1 = arith.constant 0 : i32
    return %c0_i32, %c0_i32_0 : i32, i32
  }
  func.func @transform_7(%arg0: i32) -> (i32, i32) {
    %c0_i32 = arith.constant 0 : i32
    %c0_i32_0 = arith.constant 0 : i32
    return %arg0, %c0_i32 : i32, i32
  }
}

</mosaic_0001>

<bundles_post_ra>
// kernel: tpu_custom_call.1
= control target key start
LH: loop header
LB: loop body
LE: loop exit
PB: predicated region body
PF: predicated region fallthrough
CT: control target
= control target key end

     0   :  { %12 = vsyncpa [#allocation3], 0  ;;  %s2395_s0 = inlined_call_operand.hbm [shape: f32[8,3072], index: 0, kind: input, shape index: {}]   ;;  %s2396_s1 = inlined_call_operand.hbm [shape: f32[3072,128], index: 1, kind: input, shape index: {}]   ;;  %s2397_s2 = inlined_call_operand.hbm [shape: f32[1,128], index: 2, kind: input, shape index: {}]   ;;  %s2398_s3 = inlined_call_operand.hbm [shape: f32[128,128], index: 3, kind: input, shape index: {}]   ;;  %s2399_s4 = inlined_call_operand.hbm [shape: f32[1,128], index: 4, kind: input, shape index: {}]   ;;  %s2400_s5 = inlined_call_operand.hbm [shape: f32[128,128], index: 5, kind: input, shape index: {}]   ;;  %s2401_s6 = inlined_call_operand.hbm [shape: f32[1,128], index: 6, kind: input, shape index: {}]   ;;  %s2402_s7 = inlined_call_operand.hbm [shape: f32[8,128], index: 7, kind: output, shape index: {}]  }
   0x1   :  { %13 = vsyncpa [#allocation6], 0 }
   0x2   :  { %14 = vsyncpa [#allocation9], 0 }
   0x3   :  { %15 = vsyncpa [#allocation12], 0 }
   0x4   :  { %16 = vsyncpa [#allocation4], 0  ;;  %s2285_s24 = smov [#allocation5]  }
   0x5   :  { %s32_s25 = sshll.u32 %s2285_s24, 4  ;;  %s33_s25 = int_to_ptr.vmem [resolvable:$true] %s32_s25 }
   0x6   :  { %s2123_s26 = scalar_lea.vmem %s33_s25, 49152  ;;  %p2128_p1 = scmp.lt.s32.totalorder %s33_s25, %s33_s25 }
   0x7   :  { %p2124_p0 = scmp.ne.s32.totalorder %s33_s25, %s2123_s26  ;;  %p2129_p2 = scmp.lt.s32.totalorder %s2123_s26, %s2123_s26 }
   0x9   :  { %p2130_p3 = por %p2129_p2, %p2128_p1 }
   0xb   :  { %p2131_p4 = pnand %p2130_p3, %p2124_p0 }
   0xd   :  { %2134 = shalt.err (!%p2131_p4)
}
   0xe   :  { %s2286_s27 = smov 128   ;;  %s2287_s28 = smov 8  }
   0xf   :  { %38 = dma.hbm_to_vmem [thread:$0]  %s2396_s1, 49152, %s33_s25, [#allocation6], %s2286_s27, %s2286_s27, %s2287_s28  }
  0x10   :  { %s2288_s8 = smov [#allocation8]   ;;  %s2289_s10 = smov [#allocation11]  }
  0x11   :  { %s54_s9 = sshll.u32 %s2288_s8, 4  ;;  %s76_s11 = sshll.u32 %s2289_s10, 4  ;;  %s55_s9 = int_to_ptr.vmem [resolvable:$true] %s54_s9  ;;  %s77_s11 = int_to_ptr.vmem [resolvable:$true] %s76_s11 }
  0x12   :  { %s2143_s12 = scalar_lea.vmem %s55_s9, 2048  ;;  %p2148_p6 = scmp.lt.s32.totalorder %s55_s9, %s55_s9 }
  0x13   :  { %p2144_p5 = scmp.ne.s32.totalorder %s55_s9, %s2143_s12  ;;  %p2149_p7 = scmp.lt.s32.totalorder %s2143_s12, %s2143_s12 }
  0x15   :  { %p2150_p8 = por %p2149_p7, %p2148_p6 }
  0x17   :  { %p2151_p9 = pnand %p2150_p8, %p2144_p5 }
  0x19   :  { %2154 = shalt.err (!%p2151_p9)
}
  0x1a   :  { %60 = dma.hbm_to_vmem [thread:$0]  %s2398_s3, 2048, %s55_s9, [#allocation9], %s2286_s27, %s2286_s27, %s2287_s28  }
  0x1b   :  { %s2163_s15 = scalar_lea.vmem %s77_s11, 2048  ;;  %p2168_p11 = scmp.lt.s32.totalorder %s77_s11, %s77_s11 }
  0x1c   :  { %p2164_p10 = scmp.ne.s32.totalorder %s77_s11, %s2163_s15  ;;  %p2169_p12 = scmp.lt.s32.totalorder %s2163_s15, %s2163_s15 }
  0x1e   :  { %p2170_p13 = por %p2169_p12, %p2168_p11 }
  0x20   :  { %p2171_p0 = pnand %p2170_p13, %p2164_p10 }
  0x22   :  { %2174 = shalt.err (!%p2171_p0)
}
  0x23   :  { %82 = dma.hbm_to_vmem [thread:$0]  %s2400_s5, 2048, %s77_s11, [#allocation12], %s2286_s27, %s2286_s27, %s2287_s28  }
  0x24   :  { %s2290_s17 = smov [#allocation2]   ;;  %s2291_s19 = smov [#allocation7]  }
  0x25   :  { %s23_s18 = sshll.u32 %s2290_s17, 4  ;;  %s45_s20 = sshll.u32 %s2291_s19, 4  ;;  %s24_s18 = int_to_ptr.vmem [resolvable:$true] %s23_s18  ;;  %s46_s20 = int_to_ptr.vmem [resolvable:$true] %s45_s20 }
  0x26   :  { %s2183_s21 = scalar_lea.vmem %s24_s18, 3072  ;;  %p2188_p2 = scmp.lt.s32.totalorder %s24_s18, %s24_s18 }
  0x27   :  { %p2184_p1 = scmp.ne.s32.totalorder %s24_s18, %s2183_s21  ;;  %p2189_p3 = scmp.lt.s32.totalorder %s2183_s21, %s2183_s21 }
  0x29   :  { %p2190_p4 = por %p2189_p3, %p2188_p2 }
  0x2b   :  { %p2191_p5 = pnand %p2190_p4, %p2184_p1 }
  0x2d   :  { %2194 = shalt.err (!%p2191_p5)
}
  0x2e   :  { %26 = dma.hbm_to_vmem [thread:$0]  %s2395_s0, 3072, %s24_s18, [#allocation3]  }
  0x2f   :  { %s2203_s23 = scalar_lea.vmem %s46_s20, 16  ;;  %s2207_s5 = scalar_lea.vmem %s46_s20, 32 }
  0x30   :  { %p2204_p6 = scmp.ne.s32.totalorder %s46_s20, %s2203_s23  ;;  %p2208_p7 = scmp.lt.s32.totalorder %s46_s20, %s46_s20 }
  0x31   :  { %p2209_p8 = scmp.lt.s32.totalorder %s2207_s5, %s2203_s23 }
  0x33   :  { %p2210_p9 = por %p2209_p8, %p2208_p7 }
  0x35   :  { %p2211_p10 = pnand %p2210_p9, %p2204_p6 }
  0x37   :  { %2214 = shalt.err (!%p2211_p10)
}
  0x38   :  { %48 = dma.hbm_to_vmem [thread:$0]  %s2397_s2, 16, %s46_s20, [#allocation6]  }
  0x39   :  { %s2292_s26 = smov [#allocation10]   ;;  %s2293_s28 = smov [#allocation13]  }
  0x3a   :  { %s67_s27 = sshll.u32 %s2292_s26, 4  ;;  %s89_s29 = sshll.u32 %s2293_s28, 4  ;;  %s68_s27 = int_to_ptr.vmem [resolvable:$true] %s67_s27  ;;  %s90_s29 = int_to_ptr.vmem [resolvable:$true] %s89_s29 }
  0x3b   :  { %s2223_s30 = scalar_lea.vmem %s68_s27, 16  ;;  %s2227_s0 = scalar_lea.vmem %s68_s27, 32 }
  0x3c   :  { %p2224_p11 = scmp.ne.s32.totalorder %s68_s27, %s2223_s30  ;;  %p2228_p12 = scmp.lt.s32.totalorder %s68_s27, %s68_s27 }
  0x3d   :  { %p2229_p13 = scmp.lt.s32.totalorder %s2227_s0, %s2223_s30 }
  0x3f   :  { %p2230_p0 = por %p2229_p13, %p2228_p12 }
  0x41   :  { %p2231_p1 = pnand %p2230_p0, %p2224_p11 }
  0x43   :  { %2234 = shalt.err (!%p2231_p1)
}
  0x44   :  { %70 = dma.hbm_to_vmem [thread:$0]  %s2399_s4, 16, %s68_s27, [#allocation9]  }
  0x45   :  { %s2243_s10 = scalar_lea.vmem %s90_s29, 16  ;;  %s2247_s2 = scalar_lea.vmem %s90_s29, 32 }
  0x46   :  { %p2244_p2 = scmp.ne.s32.totalorder %s90_s29, %s2243_s10  ;;  %p2248_p3 = scmp.lt.s32.totalorder %s90_s29, %s90_s29 }
  0x47   :  { %p2249_p4 = scmp.lt.s32.totalorder %s2247_s2, %s2243_s10 }
  0x49   :  { %p2250_p5 = por %p2249_p4, %p2248_p3 }
  0x4b   :  { %p2251_p6 = pnand %p2250_p5, %p2244_p2 }
  0x4d   :  { %2254 = shalt.err (!%p2251_p6)
}
  0x4e   :  { %92 = dma.hbm_to_vmem [thread:$0]  %s2401_s6, 16, %s90_s29, [#allocation12]  }
  0x4f   :  { %2275 = dma.done.wait [#allocation3], 3072  }
  0x50   :  { %2276 = vsyncadd [#allocation3], 4294964224 }
  0x51   :  { %2277 = dma.done.wait [#allocation6], 49168  }
  0x52   :  { %2278 = vsyncadd [#allocation6], 4294918128 }
  0x53   :  { %2279 = dma.done.wait [#allocation9], 2064  }
  0x54   :  { %2280 = vsyncadd [#allocation9], 4294965232 }
  0x55   :  { %2281 = dma.done.wait [#allocation12], 2064  }
  0x56   :  { %2282 = vsyncadd [#allocation12], 4294965232  ;;  %v169_v0 = vld [vmem:[#allocation5 + $0xf8] sm:$0xff]  ;;  %v168_v4 = vld [vmem:[#allocation5 + $0xf0] sm:$0xff]  ;;  %vm2295_vm0 = vmmov 0   ;;  %s2296_s4 = smov [#allocation14]  }
  0x57   :  { %v201_v1 = vld [vmem:[#allocation5 + $0x1f8] sm:$0xff]  ;;  %1579 = vmatprep.subr.mxu0 %v169_v0  ;;  %v200_v5 = vld [vmem:[#allocation5 + $0x1f0] sm:$0xff]  ;;  %v167_v8 = vld [vmem:[#allocation5 + $0xe8] sm:$0xff]  ;;  %s1564_s6 = sshll.u32 %s2296_s4, 4  ;;  %s1565_s6 = int_to_ptr.vmem [resolvable:$true] %s1564_s6 }
  0x58   :  { %v153_v2 = vld [vmem:[#allocation5 + $0x78] sm:$0xff]  ;;  %1614 = vmatprep.subr.mxu1 %v201_v1  ;;  %v152_v6 = vld [vmem:[#allocation5 + $0x70] sm:$0xff]  ;;  %v199_v9 = vld [vmem:[#allocation5 + $0x1e8] sm:$0xff]  ;;  %s2255_s13 = scalar_lea.vmem %s1565_s6, 128  ;;  %p2260_p8 = scmp.lt.s32.totalorder %s1565_s6, %s1565_s6 }
  0x59   :  { %v185_v3 = vld [vmem:[#allocation5 + $0x178] sm:$0xff]  ;;  %1580 = vmatpush3.msra.mxu0 %v153_v2  ;;  %v184_v7 = vld [vmem:[#allocation5 + $0x170] sm:$0xff]  ;;  %v151_v10 = vld [vmem:[#allocation5 + $0x68] sm:$0xff]  ;;  %p2256_p7 = scmp.ne.s32.totalorder %s1565_s6, %s2255_s13  ;;  %p2261_p9 = scmp.lt.s32.totalorder %s2255_s13, %s2255_s13 }
  0x5a   :  { %1615 = vmatpush3.msra.mxu1 %v185_v3  ;;  %1581 = vmatprep.subr.mxu0 %v168_v4  ;;  %v183_v11 = vld [vmem:[#allocation5 + $0x168] sm:$0xff]  ;;  %v166_v12 = vld [vmem:[#allocation5 + $0xe0] sm:$0xff]  ;;  %v165_v16 = vld [vmem:[#allocation5 + $0xd8] sm:$0xff] }
  0x5b   :  { %1616 = vmatprep.subr.mxu1 %v200_v5  ;;  %1582 = vmatpush3.msra.mxu0 %v152_v6  ;;  %v198_v13 = vld [vmem:[#allocation5 + $0x1e0] sm:$0xff]  ;;  %v197_v17 = vld [vmem:[#allocation5 + $0x1d8] sm:$0xff]  ;;  %v164_v20 = vld [vmem:[#allocation5 + $0xd0] sm:$0xff]  ;;  %p2262_p10 = por %p2261_p9, %p2260_p8 }
  0x5c   :  { %1617 = vmatpush3.msra.mxu1 %v184_v7  ;;  %1583 = vmatprep.subr.mxu0 %v167_v8  ;;  %v150_v14 = vld [vmem:[#allocation5 + $0x60] sm:$0xff]  ;;  %v149_v18 = vld [vmem:[#allocation5 + $0x58] sm:$0xff]  ;;  %v196_v21 = vld [vmem:[#allocation5 + $0x1d0] sm:$0xff] }
  0x5d   :  { %1618 = vmatprep.subr.mxu1 %v199_v9  ;;  %v182_v15 = vld [vmem:[#allocation5 + $0x160] sm:$0xff]  ;;  %1584 = vmatpush3.msra.mxu0 %v151_v10  ;;  %v181_v19 = vld [vmem:[#allocation5 + $0x158] sm:$0xff]  ;;  %v148_v22 = vld [vmem:[#allocation5 + $0x50] sm:$0xff]  ;;  %p2263_p11 = pnand %p2262_p10, %p2256_p7 }
  0x5e   :  { %1619 = vmatpush3.msra.mxu1 %v183_v11  ;;  %1585 = vmatprep.subr.mxu0 %v166_v12  ;;  %v180_v23 = vld [vmem:[#allocation5 + $0x150] sm:$0xff]  ;;  %v163_v24 = vld [vmem:[#allocation5 + $0xc8] sm:$0xff]  ;;  %v162_v28 = vld [vmem:[#allocation5 + $0xc0] sm:$0xff] }
  0x5f   :  { %1620 = vmatprep.subr.mxu1 %v198_v13  ;;  %1586 = vmatpush3.msra.mxu0 %v150_v14  ;;  %v195_v25 = vld [vmem:[#allocation5 + $0x1c8] sm:$0xff]  ;;  %v194_v29 = vld [vmem:[#allocation5 + $0x1c0] sm:$0xff]  ;;  %v161_v32 = vld [vmem:[#allocation5 + $0xb8] sm:$0xff] }
  0x60   :  { %1621 = vmatpush3.msra.mxu1 %v182_v15  ;;  %1587 = vmatprep.subr.mxu0 %v165_v16  ;;  %v147_v26 = vld [vmem:[#allocation5 + $0x48] sm:$0xff]  ;;  %v146_v30 = vld [vmem:[#allocation5 + $0x40] sm:$0xff]  ;;  %v193_v33 = vld [vmem:[#allocation5 + $0x1b8] sm:$0xff] }
  0x61   :  { %1622 = vmatprep.subr.mxu1 %v197_v17  ;;  %1588 = vmatpush3.msra.mxu0 %v149_v18  ;;  %v179_v27 = vld [vmem:[#allocation5 + $0x148] sm:$0xff]  ;;  %v178_v31 = vld [vmem:[#allocation5 + $0x140] sm:$0xff]  ;;  %v145_v34 = vld [vmem:[#allocation5 + $0x38] sm:$0xff] }
  0x62   :  { %1623 = vmatpush3.msra.mxu1 %v181_v19  ;;  %1589 = vmatprep.subr.mxu0 %v164_v20  ;;  %v177_v35 = vld [vmem:[#allocation5 + $0x138] sm:$0xff]  ;;  %v160_v36 = vld [vmem:[#allocation5 + $0xb0] sm:$0xff]  ;;  %v159_v40 = vld [vmem:[#allocation5 + $0xa8] sm:$0xff] }
  0x63   :  { %1624 = vmatprep.subr.mxu1 %v196_v21  ;;  %1590 = vmatpush3.msra.mxu0 %v148_v22  ;;  %v192_v37 = vld [vmem:[#allocation5 + $0x1b0] sm:$0xff]  ;;  %v191_v41 = vld [vmem:[#allocation5 + $0x1a8] sm:$0xff]  ;;  %v158_v44 = vld [vmem:[#allocation5 + $0xa0] sm:$0xff] }
  0x64   :  { %1625 = vmatpush3.msra.mxu1 %v180_v23  ;;  %1591 = vmatprep.subr.mxu0 %v163_v24  ;;  %v144_v38 = vld [vmem:[#allocation5 + $0x30] sm:$0xff]  ;;  %v143_v42 = vld [vmem:[#allocation5 + $0x28] sm:$0xff]  ;;  %v190_v45 = vld [vmem:[#allocation5 + $0x1a0] sm:$0xff] }
  0x65   :  { %1626 = vmatprep.subr.mxu1 %v195_v25  ;;  %1592 = vmatpush3.msra.mxu0 %v147_v26  ;;  %v176_v39 = vld [vmem:[#allocation5 + $0x130] sm:$0xff]  ;;  %v175_v43 = vld [vmem:[#allocation5 + $0x128] sm:$0xff]  ;;  %v142_v46 = vld [vmem:[#allocation5 + $0x20] sm:$0xff] }
  0x66   :  { %1627 = vmatpush3.msra.mxu1 %v179_v27  ;;  %1593 = vmatprep.subr.mxu0 %v162_v28  ;;  %v174_v47 = vld [vmem:[#allocation5 + $0x120] sm:$0xff]  ;;  %v157_v48 = vld [vmem:[#allocation5 + $0x98] sm:$0xff]  ;;  %v156_v52 = vld [vmem:[#allocation5 + $0x90] sm:$0xff] }
  0x67   :  { %1628 = vmatprep.subr.mxu1 %v194_v29  ;;  %1594 = vmatpush3.msra.mxu0 %v146_v30  ;;  %v189_v49 = vld [vmem:[#allocation5 + $0x198] sm:$0xff]  ;;  %v188_v53 = vld [vmem:[#allocation5 + $0x190] sm:$0xff]  ;;  %v155_v56 = vld [vmem:[#allocation5 + $0x88] sm:$0xff] }
  0x68   :  { %1629 = vmatpush3.msra.mxu1 %v178_v31  ;;  %1595 = vmatprep.subr.mxu0 %v161_v32  ;;  %v141_v50 = vld [vmem:[#allocation5 + $0x18] sm:$0xff]  ;;  %v140_v54 = vld [vmem:[#allocation5 + $0x10] sm:$0xff]  ;;  %v187_v57 = vld [vmem:[#allocation5 + $0x188] sm:$0xff] }
  0x69   :  { %1630 = vmatprep.subr.mxu1 %v193_v33  ;;  %1596 = vmatpush3.msra.mxu0 %v145_v34  ;;  %v173_v51 = vld [vmem:[#allocation5 + $0x118] sm:$0xff]  ;;  %v172_v55 = vld [vmem:[#allocation5 + $0x110] sm:$0xff]  ;;  %v139_v58 = vld [vmem:[#allocation5 + $0x8] sm:$0xff] }
  0x6a   :  { %1631 = vmatpush3.msra.mxu1 %v177_v35  ;;  %1597 = vmatprep.subr.mxu0 %v160_v36  ;;  %v171_v59 = vld [vmem:[#allocation5 + $0x108] sm:$0xff]  ;;  %v154_v60 = vld [vmem:[#allocation5 + $0x80] sm:$0xff]  ;;  %v117_v2 = vld [vmem:[#allocation2 + $0x18] sm:$0xff] }
  0x6b   :  { %1632 = vmatprep.subr.mxu1 %v192_v37  ;;  %1598 = vmatpush3.msra.mxu0 %v144_v38  ;;  %v186_v61 = vld [vmem:[#allocation5 + $0x180] sm:$0xff]  ;;  %v115_v63 = vld [vmem:[#allocation2 + $0x8] sm:$0xff]  ;;  %v233_v3 = vld [vmem:[#allocation5 + $0x2f8] sm:$0xff] }
  0x6c   :  { %1633 = vmatpush3.msra.mxu1 %v176_v39  ;;  %1599 = vmatprep.subr.mxu0 %v159_v40  ;;  %v138_v62 = vld [vmem:[#allocation5] sm:$0xff]  ;;  %v265_v4 = vld [vmem:[#allocation5 + $0x3f8] sm:$0xff]  ;;  %v116_v5 = vld [vmem:[#allocation2 + $0x10] sm:$0xff] }
  0x6d   :  { %1634 = vmatprep.subr.mxu1 %v191_v41  ;;  %1600 = vmatpush3.msra.mxu0 %v143_v42  ;;  %v170_v0 = vld [vmem:[#allocation5 + $0x100] sm:$0xff]  ;;  %v217_v6 = vld [vmem:[#allocation5 + $0x278] sm:$0xff]  ;;  %v232_v8 = vld [vmem:[#allocation5 + $0x2f0] sm:$0xff] }
  0x6e   :  { %1635 = vmatpush3.msra.mxu1 %v175_v43  ;;  %1601 = vmatprep.subr.mxu0 %v158_v44  ;;  %v114_v1 = vld [vmem:[#allocation2] sm:$0xff]  ;;  %v249_v7 = vld [vmem:[#allocation5 + $0x378] sm:$0xff]  ;;  %v264_v9 = vld [vmem:[#allocation5 + $0x3f0] sm:$0xff] }
  0x6f   :  { %1636 = vmatprep.subr.mxu1 %v190_v45  ;;  %1602 = vmatpush3.msra.mxu0 %v142_v46  ;;  %v216_v10 = vld [vmem:[#allocation5 + $0x270] sm:$0xff]  ;;  %v231_v12 = vld [vmem:[#allocation5 + $0x2e8] sm:$0xff]  ;;  %v230_v16 = vld [vmem:[#allocation5 + $0x2e0] sm:$0xff] }
  0x70   :  { %1637 = vmatpush3.msra.mxu1 %v174_v47  ;;  %1603 = vmatprep.subr.mxu0 %v157_v48  ;;  %v248_v11 = vld [vmem:[#allocation5 + $0x370] sm:$0xff]  ;;  %v263_v13 = vld [vmem:[#allocation5 + $0x3e8] sm:$0xff]  ;;  %v262_v17 = vld [vmem:[#allocation5 + $0x3e0] sm:$0xff] }
  0x71   :  { %1638 = vmatprep.subr.mxu1 %v189_v49  ;;  %1604 = vmatpush3.msra.mxu0 %v141_v50  ;;  %v215_v14 = vld [vmem:[#allocation5 + $0x268] sm:$0xff]  ;;  %v214_v18 = vld [vmem:[#allocation5 + $0x260] sm:$0xff]  ;;  %v229_v20 = vld [vmem:[#allocation5 + $0x2d8] sm:$0xff] }
  0x72   :  { %1639 = vmatpush3.msra.mxu1 %v173_v51  ;;  %1605 = vmatprep.subr.mxu0 %v156_v52  ;;  %v247_v15 = vld [vmem:[#allocation5 + $0x368] sm:$0xff]  ;;  %v246_v19 = vld [vmem:[#allocation5 + $0x360] sm:$0xff]  ;;  %v261_v21 = vld [vmem:[#allocation5 + $0x3d8] sm:$0xff] }
  0x73   :  { %1640 = vmatprep.subr.mxu1 %v188_v53  ;;  %1606 = vmatpush3.msra.mxu0 %v140_v54  ;;  %v213_v22 = vld [vmem:[#allocation5 + $0x258] sm:$0xff]  ;;  %v228_v24 = vld [vmem:[#allocation5 + $0x2d0] sm:$0xff]  ;;  %v227_v28 = vld [vmem:[#allocation5 + $0x2c8] sm:$0xff] }
  0x74   :  { %1641 = vmatpush3.msra.mxu1 %v172_v55  ;;  %1607 = vmatprep.subr.mxu0 %v155_v56  ;;  %v245_v23 = vld [vmem:[#allocation5 + $0x358] sm:$0xff]  ;;  %v260_v25 = vld [vmem:[#allocation5 + $0x3d0] sm:$0xff]  ;;  %v259_v29 = vld [vmem:[#allocation5 + $0x3c8] sm:$0xff] }
  0x75   :  { %1642 = vmatprep.subr.mxu1 %v187_v57  ;;  %1608 = vmatpush3.msra.mxu0 %v139_v58  ;;  %v212_v26 = vld [vmem:[#allocation5 + $0x250] sm:$0xff]  ;;  %v211_v30 = vld [vmem:[#allocation5 + $0x248] sm:$0xff]  ;;  %v226_v32 = vld [vmem:[#allocation5 + $0x2c0] sm:$0xff] }
  0x76   :  { %1643 = vmatpush3.msra.mxu1 %v171_v59  ;;  %1609 = vmatprep.subr.mxu0 %v154_v60  ;;  %v244_v27 = vld [vmem:[#allocation5 + $0x350] sm:$0xff]  ;;  %v243_v31 = vld [vmem:[#allocation5 + $0x348] sm:$0xff]  ;;  %v258_v33 = vld [vmem:[#allocation5 + $0x3c0] sm:$0xff] }
  0x77   :  { %1644 = vmatprep.subr.mxu1 %v186_v61  ;;  %1610 = vmatpush3.msra.mxu0 %v138_v62  ;;  %v210_v34 = vld [vmem:[#allocation5 + $0x240] sm:$0xff]  ;;  %v225_v36 = vld [vmem:[#allocation5 + $0x2b8] sm:$0xff]  ;;  %v224_v40 = vld [vmem:[#allocation5 + $0x2b0] sm:$0xff] }
  0x78   :  { %593 = vmatprep.mubr.f32.mxu0 %v115_v63  ;;  %1645 = vmatpush3.msra.mxu1 %v170_v0  ;;  %v242_v35 = vld [vmem:[#allocation5 + $0x340] sm:$0xff]  ;;  %v257_v37 = vld [vmem:[#allocation5 + $0x3b8] sm:$0xff]  ;;  %v256_v41 = vld [vmem:[#allocation5 + $0x3b0] sm:$0xff] }
  0x79   :  { %594 = vmatmul.mubr.f32.vlgmr.msra.gmra.mxu0 %v114_v1  ;;  %663 = vmatprep.mubr.f32.mxu1 %v117_v2  ;;  %v209_v38 = vld [vmem:[#allocation5 + $0x238] sm:$0xff]  ;;  %v208_v42 = vld [vmem:[#allocation5 + $0x230] sm:$0xff]  ;;  %v223_v44 = vld [vmem:[#allocation5 + $0x2a8] sm:$0xff] }
  0x7a   :  { %1649 = vmatprep.subr.mxu0 %v233_v3  ;;  %1684 = vmatprep.subr.mxu1 %v265_v4  ;;  %v241_v39 = vld [vmem:[#allocation5 + $0x338] sm:$0xff]  ;;  %v240_v43 = vld [vmem:[#allocation5 + $0x330] sm:$0xff]  ;;  %v255_v45 = vld [vmem:[#allocation5 + $0x3a8] sm:$0xff] }
  0x7b   :  { %664 = vmatmul.mubr.f32.vlgmr.msra.gmra.mxu1 %v116_v5  ;;  %1650 = vmatpush3.msra.mxu0 %v217_v6  ;;  %v207_v46 = vld [vmem:[#allocation5 + $0x228] sm:$0xff]  ;;  %v222_v48 = vld [vmem:[#allocation5 + $0x2a0] sm:$0xff]  ;;  %v221_v52 = vld [vmem:[#allocation5 + $0x298] sm:$0xff] }
  0x7c   :  { %1685 = vmatpush3.msra.mxu1 %v249_v7  ;;  %1651 = vmatprep.subr.mxu0 %v232_v8  ;;  %v239_v47 = vld [vmem:[#allocation5 + $0x328] sm:$0xff]  ;;  %v254_v49 = vld [vmem:[#allocation5 + $0x3a0] sm:$0xff]  ;;  %v253_v53 = vld [vmem:[#allocation5 + $0x398] sm:$0xff] }
  0x7d   :  { %1686 = vmatprep.subr.mxu1 %v264_v9  ;;  %1652 = vmatpush3.msra.mxu0 %v216_v10  ;;  %v206_v50 = vld [vmem:[#allocation5 + $0x220] sm:$0xff]  ;;  %v205_v54 = vld [vmem:[#allocation5 + $0x218] sm:$0xff]  ;;  %v220_v56 = vld [vmem:[#allocation5 + $0x290] sm:$0xff] }
  0x7e   :  { %1687 = vmatpush3.msra.mxu1 %v248_v11  ;;  %1653 = vmatprep.subr.mxu0 %v231_v12  ;;  %v238_v51 = vld [vmem:[#allocation5 + $0x320] sm:$0xff]  ;;  %v237_v55 = vld [vmem:[#allocation5 + $0x318] sm:$0xff]  ;;  %v252_v57 = vld [vmem:[#allocation5 + $0x390] sm:$0xff] }
  0x7f   :  { %1688 = vmatprep.subr.mxu1 %v263_v13  ;;  %1654 = vmatpush3.msra.mxu0 %v215_v14  ;;  %v204_v58 = vld [vmem:[#allocation5 + $0x210] sm:$0xff]  ;;  %v219_v60 = vld [vmem:[#allocation5 + $0x288] sm:$0xff]  ;;  %v218_v0 = vld [vmem:[#allocation5 + $0x280] sm:$0xff] }
  0x80   :  { %1689 = vmatpush3.msra.mxu1 %v247_v15  ;;  %1655 = vmatprep.subr.mxu0 %v230_v16  ;;  %v236_v59 = vld [vmem:[#allocation5 + $0x310] sm:$0xff]  ;;  %v251_v61 = vld [vmem:[#allocation5 + $0x388] sm:$0xff]  ;;  %v250_v1 = vld [vmem:[#allocation5 + $0x380] sm:$0xff] }
  0x81   :  { %1690 = vmatprep.subr.mxu1 %v262_v17  ;;  %1656 = vmatpush3.msra.mxu0 %v214_v18  ;;  %v203_v62 = vld [vmem:[#allocation5 + $0x208] sm:$0xff]  ;;  %v202_v2 = vld [vmem:[#allocation5 + $0x200] sm:$0xff]  ;;  %v121_v6 = vld [vmem:[#allocation2 + $0x38] sm:$0xff] }
  0x82   :  { %1691 = vmatpush3.msra.mxu1 %v246_v19  ;;  %1657 = vmatprep.subr.mxu0 %v229_v20  ;;  %v235_v63 = vld [vmem:[#allocation5 + $0x308] sm:$0xff]  ;;  %v234_v4 = vld [vmem:[#allocation5 + $0x300] sm:$0xff]  ;;  %v297_v7 = vld [vmem:[#allocation5 + $0x4f8] sm:$0xff] }
  0x83   :  { %1692 = vmatprep.subr.mxu1 %v261_v21  ;;  %1658 = vmatpush3.msra.mxu0 %v213_v22  ;;  %v119_v3 = vld [vmem:[#allocation2 + $0x28] sm:$0xff]  ;;  %v118_v5 = vld [vmem:[#allocation2 + $0x20] sm:$0xff]  ;;  %v329_v8 = vld [vmem:[#allocation5 + $0x5f8] sm:$0xff] }
  0x84   :  { %1693 = vmatpush3.msra.mxu1 %v245_v23  ;;  %1659 = vmatprep.subr.mxu0 %v228_v24  ;;  %v120_v9 = vld [vmem:[#allocation2 + $0x30] sm:$0xff]  ;;  %v281_v10 = vld [vmem:[#allocation5 + $0x478] sm:$0xff]  ;;  %v295_v16 = vld [vmem:[#allocation5 + $0x4e8] sm:$0xff] }
  0x85   :  { %1694 = vmatprep.subr.mxu1 %v260_v25  ;;  %1660 = vmatpush3.msra.mxu0 %v212_v26  ;;  %v313_v11 = vld [vmem:[#allocation5 + $0x578] sm:$0xff]  ;;  %v296_v12 = vld [vmem:[#allocation5 + $0x4f0] sm:$0xff]  ;;  %v327_v17 = vld [vmem:[#allocation5 + $0x5e8] sm:$0xff] }
  0x86   :  { %1695 = vmatpush3.msra.mxu1 %v244_v27  ;;  %1661 = vmatprep.subr.mxu0 %v227_v28  ;;  %v328_v13 = vld [vmem:[#allocation5 + $0x5f0] sm:$0xff]  ;;  %v279_v18 = vld [vmem:[#allocation5 + $0x468] sm:$0xff]  ;;  %v294_v20 = vld [vmem:[#allocation5 + $0x4e0] sm:$0xff] }
  0x87   :  { %1696 = vmatprep.subr.mxu1 %v259_v29  ;;  %1662 = vmatpush3.msra.mxu0 %v211_v30  ;;  %v280_v14 = vld [vmem:[#allocation5 + $0x470] sm:$0xff]  ;;  %v311_v19 = vld [vmem:[#allocation5 + $0x568] sm:$0xff]  ;;  %v326_v21 = vld [vmem:[#allocation5 + $0x5e0] sm:$0xff] }
  0x88   :  { %1697 = vmatpush3.msra.mxu1 %v243_v31  ;;  %1663 = vmatprep.subr.mxu0 %v226_v32  ;;  %v312_v15 = vld [vmem:[#allocation5 + $0x570] sm:$0xff]  ;;  %v278_v22 = vld [vmem:[#allocation5 + $0x460] sm:$0xff]  ;;  %v293_v24 = vld [vmem:[#allocation5 + $0x4d8] sm:$0xff] }
  0x89   :  { %1698 = vmatprep.subr.mxu1 %v258_v33  ;;  %1664 = vmatpush3.msra.mxu0 %v210_v34  ;;  %v310_v23 = vld [vmem:[#allocation5 + $0x560] sm:$0xff]  ;;  %v325_v25 = vld [vmem:[#allocation5 + $0x5d8] sm:$0xff]  ;;  %v292_v28 = vld [vmem:[#allocation5 + $0x4d0] sm:$0xff] }
  0x8a   :  { %1699 = vmatpush3.msra.mxu1 %v242_v35  ;;  %1665 = vmatprep.subr.mxu0 %v225_v36  ;;  %v277_v26 = vld [vmem:[#allocation5 + $0x458] sm:$0xff]  ;;  %v324_v29 = vld [vmem:[#allocation5 + $0x5d0] sm:$0xff]  ;;  %v291_v32 = vld [vmem:[#allocation5 + $0x4c8] sm:$0xff] }
  0x8b   :  { %1700 = vmatprep.subr.mxu1 %v257_v37  ;;  %1666 = vmatpush3.msra.mxu0 %v209_v38  ;;  %v309_v27 = vld [vmem:[#allocation5 + $0x558] sm:$0xff]  ;;  %v276_v30 = vld [vmem:[#allocation5 + $0x450] sm:$0xff]  ;;  %v323_v33 = vld [vmem:[#allocation5 + $0x5c8] sm:$0xff] }
  0x8c   :  { %1701 = vmatpush3.msra.mxu1 %v241_v39  ;;  %1667 = vmatprep.subr.mxu0 %v224_v40  ;;  %v308_v31 = vld [vmem:[#allocation5 + $0x550] sm:$0xff]  ;;  %v275_v34 = vld [vmem:[#allocation5 + $0x448] sm:$0xff]  ;;  %v290_v36 = vld [vmem:[#allocation5 + $0x4c0] sm:$0xff] }
  0x8d   :  { %1702 = vmatprep.subr.mxu1 %v256_v41  ;;  %1668 = vmatpush3.msra.mxu0 %v208_v42  ;;  %v307_v35 = vld [vmem:[#allocation5 + $0x548] sm:$0xff]  ;;  %v322_v37 = vld [vmem:[#allocation5 + $0x5c0] sm:$0xff]  ;;  %v289_v40 = vld [vmem:[#allocation5 + $0x4b8] sm:$0xff] }
  0x8e   :  { %1703 = vmatpush3.msra.mxu1 %v240_v43  ;;  %1669 = vmatprep.subr.mxu0 %v223_v44  ;;  %v274_v38 = vld [vmem:[#allocation5 + $0x440] sm:$0xff]  ;;  %v321_v41 = vld [vmem:[#allocation5 + $0x5b8] sm:$0xff]  ;;  %v288_v44 = vld [vmem:[#allocation5 + $0x4b0] sm:$0xff] }
  0x8f   :  { %1704 = vmatprep.subr.mxu1 %v255_v45  ;;  %1670 = vmatpush3.msra.mxu0 %v207_v46  ;;  %v306_v39 = vld [vmem:[#allocation5 + $0x540] sm:$0xff]  ;;  %v273_v42 = vld [vmem:[#allocation5 + $0x438] sm:$0xff]  ;;  %v320_v45 = vld [vmem:[#allocation5 + $0x5b0] sm:$0xff] }
  0x90   :  { %1705 = vmatpush3.msra.mxu1 %v239_v47  ;;  %1671 = vmatprep.subr.mxu0 %v222_v48  ;;  %v305_v43 = vld [vmem:[#allocation5 + $0x538] sm:$0xff]  ;;  %v272_v46 = vld [vmem:[#allocation5 + $0x430] sm:$0xff]  ;;  %v287_v48 = vld [vmem:[#allocation5 + $0x4a8] sm:$0xff] }
  0x91   :  { %1706 = vmatprep.subr.mxu1 %v254_v49  ;;  %1672 = vmatpush3.msra.mxu0 %v206_v50  ;;  %v304_v47 = vld [vmem:[#allocation5 + $0x530] sm:$0xff]  ;;  %v319_v49 = vld [vmem:[#allocation5 + $0x5a8] sm:$0xff] }
  0x92   :  { %1707 = vmatpush3.msra.mxu1 %v238_v51  ;;  %1673 = vmatprep.subr.mxu0 %v221_v52  ;;  %v271_v50 = vld [vmem:[#allocation5 + $0x428] sm:$0xff]  ;;  %v286_v52 = vld [vmem:[#allocation5 + $0x4a0] sm:$0xff] }
  0x93   :  { %1708 = vmatprep.subr.mxu1 %v253_v53  ;;  %1674 = vmatpush3.msra.mxu0 %v205_v54  ;;  %v303_v51 = vld [vmem:[#allocation5 + $0x528] sm:$0xff]  ;;  %v318_v53 = vld [vmem:[#allocation5 + $0x5a0] sm:$0xff] }
  0x94   :  { %1709 = vmatpush3.msra.mxu1 %v237_v55  ;;  %1675 = vmatprep.subr.mxu0 %v220_v56  ;;  %v270_v54 = vld [vmem:[#allocation5 + $0x420] sm:$0xff]  ;;  %v285_v56 = vld [vmem:[#allocation5 + $0x498] sm:$0xff] }
  0x95   :  { %1710 = vmatprep.subr.mxu1 %v252_v57  ;;  %1676 = vmatpush3.msra.mxu0 %v204_v58  ;;  %v302_v55 = vld [vmem:[#allocation5 + $0x520] sm:$0xff]  ;;  %v317_v57 = vld [vmem:[#allocation5 + $0x598] sm:$0xff] }
  0x96   :  { %1711 = vmatpush3.msra.mxu1 %v236_v59  ;;  %1677 = vmatprep.subr.mxu0 %v219_v60  ;;  %v269_v58 = vld [vmem:[#allocation5 + $0x418] sm:$0xff]  ;;  %v284_v60 = vld [vmem:[#allocation5 + $0x490] sm:$0xff] }
  0x97   :  { %1712 = vmatprep.subr.mxu1 %v251_v61  ;;  %1678 = vmatpush3.msra.mxu0 %v203_v62  ;;  %v301_v59 = vld [vmem:[#allocation5 + $0x518] sm:$0xff]  ;;  %v316_v61 = vld [vmem:[#allocation5 + $0x590] sm:$0xff] }
  0x98   :  { %1713 = vmatpush3.msra.mxu1 %v235_v63  ;;  %1679 = vmatprep.subr.mxu0 %v218_v0  ;;  %v268_v62 = vld [vmem:[#allocation5 + $0x410] sm:$0xff]  ;;  %v283_v0 = vld [vmem:[#allocation5 + $0x488] sm:$0xff] }
  0x99   :  { %1714 = vmatprep.subr.mxu1 %v250_v1  ;;  %1680 = vmatpush3.msra.mxu0 %v202_v2  ;;  %v300_v63 = vld [vmem:[#allocation5 + $0x510] sm:$0xff]  ;;  %v315_v1 = vld [vmem:[#allocation5 + $0x588] sm:$0xff] }
  0x9a   :  { %733 = vmatprep.mubr.f32.mxu0 %v119_v3  ;;  %1715 = vmatpush3.msra.mxu1 %v234_v4  ;;  %v267_v2 = vld [vmem:[#allocation5 + $0x408] sm:$0xff]  ;;  %v282_v4 = vld [vmem:[#allocation5 + $0x480] sm:$0xff] }
  0x9b   :  { %734 = vmatmul.mubr.f32.vlgmr.msra.gmra.mxu0 %v118_v5  ;;  %803 = vmatprep.mubr.f32.mxu1 %v121_v6  ;;  %v299_v3 = vld [vmem:[#allocation5 + $0x508] sm:$0xff]  ;;  %v314_v5 = vld [vmem:[#allocation5 + $0x580] sm:$0xff] }
  0x9c   :  { %1719 = vmatprep.subr.mxu0 %v297_v7  ;;  %1754 = vmatprep.subr.mxu1 %v329_v8  ;;  %v266_v6 = vld [vmem:[#allocation5 + $0x400] sm:$0xff]  ;;  %v123_v7 = vld [vmem:[#allocation2 + $0x48] sm:$0xff] }
  0x9d   :  { %804 = vmatmul.mubr.f32.vlgmr.msra.gmra.mxu1 %v120_v9  ;;  %1720 = vmatpush3.msra.mxu0 %v281_v10  ;;  %v298_v8 = vld [vmem:[#allocation5 + $0x500] sm:$0xff]  ;;  %v125_v10 = vld [vmem:[#allocation2 + $0x58] sm:$0xff] }
  0x9e   :  { %1755 = vmatpush3.msra.mxu1 %v313_v11  ;;  %1721 = vmatprep.subr.mxu0 %v296_v12  ;;  %v122_v9 = vld [vmem:[#allocation2 + $0x40] sm:$0xff]  ;;  %v361_v11 = vld [vmem:[#allocation5 + $0x6f8] sm:$0xff] }
  0x9f   :  { %1756 = vmatprep.subr.mxu1 %v328_v13  ;;  %1722 = vmatpush3.msra.mxu0 %v280_v14  ;;  %v393_v12 = vld [vmem:[#allocation5 + $0x7f8] sm:$0xff]  ;;  %v124_v13 = vld [vmem:[#allocation2 + $0x50] sm:$0xff] }
  0xa0   :  { %1757 = vmatpush3.msra.mxu1 %v312_v15  ;;  %1723 = vmatprep.subr.mxu0 %v295_v16  ;;  %v345_v14 = vld [vmem:[#allocation5 + $0x678] sm:$0xff]  ;;  %v360_v16 = vld [vmem:[#allocation5 + $0x6f0] sm:$0xff] }
  0xa1   :  { %1758 = vmatprep.subr.mxu1 %v327_v17  ;;  %1724 = vmatpush3.msra.mxu0 %v279_v18  ;;  %v377_v15 = vld [vmem:[#allocation5 + $0x778] sm:$0xff]  ;;  %v392_v17 = vld [vmem:[#allocation5 + $0x7f0] sm:$0xff] }
  0xa2   :  { %1759 = vmatpush3.msra.mxu1 %v311_v19  ;;  %1725 = vmatprep.subr.mxu0 %v294_v20  ;;  %v344_v18 = vld [vmem:[#allocation5 + $0x670] sm:$0xff]  ;;  %v359_v20 = vld [vmem:[#allocation5 + $0x6e8] sm:$0xff] }
  0xa3   :  { %1760 = vmatprep.subr.mxu1 %v326_v21  ;;  %1726 = vmatpush3.msra.mxu0 %v278_v22  ;;  %v376_v19 = vld [vmem:[#allocation5 + $0x770] sm:$0xff]  ;;  %v391_v21 = vld [vmem:[#allocation5 + $0x7e8] sm:$0xff] }
  0xa4   :  { %1761 = vmatpush3.msra.mxu1 %v310_v23  ;;  %1727 = vmatprep.subr.mxu0 %v293_v24  ;;  %v343_v22 = vld [vmem:[#allocation5 + $0x668] sm:$0xff]  ;;  %v358_v24 = vld [vmem:[#allocation5 + $0x6e0] sm:$0xff] }
  0xa5   :  { %1762 = vmatprep.subr.mxu1 %v325_v25  ;;  %1728 = vmatpush3.msra.mxu0 %v277_v26  ;;  %v375_v23 = vld [vmem:[#allocation5 + $0x768] sm:$0xff]  ;;  %v390_v25 = vld [vmem:[#allocation5 + $0x7e0] sm:$0xff] }
  0xa6   :  { %1763 = vmatpush3.msra.mxu1 %v309_v27  ;;  %1729 = vmatprep.subr.mxu0 %v292_v28  ;;  %v342_v26 = vld [vmem:[#allocation5 + $0x660] sm:$0xff]  ;;  %v357_v28 = vld [vmem:[#allocation5 + $0x6d8] sm:$0xff] }
  0xa7   :  { %1764 = vmatprep.subr.mxu1 %v324_v29  ;;  %1730 = vmatpush3.msra.mxu0 %v276_v30  ;;  %v374_v27 = vld [vmem:[#allocation5 + $0x760] sm:$0xff]  ;;  %v389_v29 = vld [vmem:[#allocation5 + $0x7d8] sm:$0xff] }
  0xa8   :  { %1765 = vmatpush3.msra.mxu1 %v308_v31  ;;  %1731 = vmatprep.subr.mxu0 %v291_v32  ;;  %v341_v30 = vld [vmem:[#allocation5 + $0x658] sm:$0xff]  ;;  %v356_v32 = vld [vmem:[#allocation5 + $0x6d0] sm:$0xff] }
  0xa9   :  { %1766 = vmatprep.subr.mxu1 %v323_v33  ;;  %1732 = vmatpush3.msra.mxu0 %v275_v34  ;;  %v373_v31 = vld [vmem:[#allocation5 + $0x758] sm:$0xff]  ;;  %v388_v33 = vld [vmem:[#allocation5 + $0x7d0] sm:$0xff] }
  0xaa   :  { %1767 = vmatpush3.msra.mxu1 %v307_v35  ;;  %1733 = vmatprep.subr.mxu0 %v290_v36  ;;  %v340_v34 = vld [vmem:[#allocation5 + $0x650] sm:$0xff]  ;;  %v355_v36 = vld [vmem:[#allocation5 + $0x6c8] sm:$0xff] }
  0xab   :  { %1768 = vmatprep.subr.mxu1 %v322_v37  ;;  %1734 = vmatpush3.msra.mxu0 %v274_v38  ;;  %v372_v35 = vld [vmem:[#allocation5 + $0x750] sm:$0xff]  ;;  %v387_v37 = vld [vmem:[#allocation5 + $0x7c8] sm:$0xff] }
  0xac   :  { %1769 = vmatpush3.msra.mxu1 %v306_v39  ;;  %1735 = vmatprep.subr.mxu0 %v289_v40  ;;  %v339_v38 = vld [vmem:[#allocation5 + $0x648] sm:$0xff]  ;;  %v354_v40 = vld [vmem:[#allocation5 + $0x6c0] sm:$0xff] }
  0xad   :  { %1770 = vmatprep.subr.mxu1 %v321_v41  ;;  %1736 = vmatpush3.msra.mxu0 %v273_v42  ;;  %v371_v39 = vld [vmem:[#allocation5 + $0x748] sm:$0xff]  ;;  %v386_v41 = vld [vmem:[#allocation5 + $0x7c0] sm:$0xff] }
  0xae   :  { %1771 = vmatpush3.msra.mxu1 %v305_v43  ;;  %1737 = vmatprep.subr.mxu0 %v288_v44  ;;  %v338_v42 = vld [vmem:[#allocation5 + $0x640] sm:$0xff]  ;;  %v353_v44 = vld [vmem:[#allocation5 + $0x6b8] sm:$0xff] }
  0xaf   :  { %1772 = vmatprep.subr.mxu1 %v320_v45  ;;  %1738 = vmatpush3.msra.mxu0 %v272_v46  ;;  %v370_v43 = vld [vmem:[#allocation5 + $0x740] sm:$0xff]  ;;  %v385_v45 = vld [vmem:[#allocation5 + $0x7b8] sm:$0xff] }
  0xb0   :  { %1773 = vmatpush3.msra.mxu1 %v304_v47  ;;  %1739 = vmatprep.subr.mxu0 %v287_v48  ;;  %v337_v46 = vld [vmem:[#allocation5 + $0x638] sm:$0xff]  ;;  %v352_v48 = vld [vmem:[#allocation5 + $0x6b0] sm:$0xff] }
  0xb1   :  { %1774 = vmatprep.subr.mxu1 %v319_v49  ;;  %1740 = vmatpush3.msra.mxu0 %v271_v50  ;;  %v369_v47 = vld [vmem:[#allocation5 + $0x738] sm:$0xff]  ;;  %v384_v49 = vld [vmem:[#allocation5 + $0x7b0] sm:$0xff] }
  0xb2   :  { %1775 = vmatpush3.msra.mxu1 %v303_v51  ;;  %1741 = vmatprep.subr.mxu0 %v286_v52  ;;  %v336_v50 = vld [vmem:[#allocation5 + $0x630] sm:$0xff]  ;;  %v351_v52 = vld [vmem:[#allocation5 + $0x6a8] sm:$0xff] }
  0xb3   :  { %1776 = vmatprep.subr.mxu1 %v318_v53  ;;  %1742 = vmatpush3.msra.mxu0 %v270_v54  ;;  %v368_v51 = vld [vmem:[#allocation5 + $0x730] sm:$0xff]  ;;  %v383_v53 = vld [vmem:[#allocation5 + $0x7a8] sm:$0xff] }
  0xb4   :  { %1777 = vmatpush3.msra.mxu1 %v302_v55  ;;  %1743 = vmatprep.subr.mxu0 %v285_v56  ;;  %v335_v54 = vld [vmem:[#allocation5 + $0x628] sm:$0xff]  ;;  %v350_v56 = vld [vmem:[#allocation5 + $0x6a0] sm:$0xff] }
  0xb5   :  { %1778 = vmatprep.subr.mxu1 %v317_v57  ;;  %1744 = vmatpush3.msra.mxu0 %v269_v58  ;;  %v367_v55 = vld [vmem:[#allocation5 + $0x728] sm:$0xff]  ;;  %v382_v57 = vld [vmem:[#allocation5 + $0x7a0] sm:$0xff] }
  0xb6   :  { %1779 = vmatpush3.msra.mxu1 %v301_v59  ;;  %1745 = vmatprep.subr.mxu0 %v284_v60  ;;  %v334_v58 = vld [vmem:[#allocation5 + $0x620] sm:$0xff]  ;;  %v349_v60 = vld [vmem:[#allocation5 + $0x698] sm:$0xff] }
  0xb7   :  { %1780 = vmatprep.subr.mxu1 %v316_v61  ;;  %1746 = vmatpush3.msra.mxu0 %v268_v62  ;;  %v366_v59 = vld [vmem:[#allocation5 + $0x720] sm:$0xff]  ;;  %v381_v61 = vld [vmem:[#allocation5 + $0x798] sm:$0xff] }
  0xb8   :  { %1781 = vmatpush3.msra.mxu1 %v300_v63  ;;  %1747 = vmatprep.subr.mxu0 %v283_v0  ;;  %v333_v62 = vld [vmem:[#allocation5 + $0x618] sm:$0xff]  ;;  %v348_v0 = vld [vmem:[#allocation5 + $0x690] sm:$0xff] }
  0xb9   :  { %1782 = vmatprep.subr.mxu1 %v315_v1  ;;  %1748 = vmatpush3.msra.mxu0 %v267_v2  ;;  %v365_v63 = vld [vmem:[#allocation5 + $0x718] sm:$0xff]  ;;  %v380_v1 = vld [vmem:[#allocation5 + $0x790] sm:$0xff] }
  0xba   :  { %1783 = vmatpush3.msra.mxu1 %v299_v3  ;;  %1749 = vmatprep.subr.mxu0 %v282_v4  ;;  %v332_v2 = vld [vmem:[#allocation5 + $0x610] sm:$0xff]  ;;  %v347_v4 = vld [vmem:[#allocation5 + $0x688] sm:$0xff] }
  0xbb   :  { %1784 = vmatprep.subr.mxu1 %v314_v5  ;;  %1750 = vmatpush3.msra.mxu0 %v266_v6  ;;  %v364_v3 = vld [vmem:[#allocation5 + $0x710] sm:$0xff]  ;;  %v379_v5 = vld [vmem:[#allocation5 + $0x788] sm:$0xff] }
  0xbc   :  { %873 = vmatprep.mubr.f32.mxu0 %v123_v7  ;;  %1785 = vmatpush3.msra.mxu1 %v298_v8  ;;  %v331_v6 = vld [vmem:[#allocation5 + $0x608] sm:$0xff]  ;;  %v346_v8 = vld [vmem:[#allocation5 + $0x680] sm:$0xff] }
  0xbd   :  { %874 = vmatmul.mubr.f32.vlgmr.msra.gmra.mxu0 %v122_v9  ;;  %943 = vmatprep.mubr.f32.mxu1 %v125_v10  ;;  %v363_v7 = vld [vmem:[#allocation5 + $0x708] sm:$0xff]  ;;  %v378_v9 = vld [vmem:[#allocation5 + $0x780] sm:$0xff] }
  0xbe   :  { %1789 = vmatprep.subr.mxu0 %v361_v11  ;;  %1824 = vmatprep.subr.mxu1 %v393_v12  ;;  %v330_v10 = vld [vmem:[#allocation5 + $0x600] sm:$0xff]  ;;  %v127_v11 = vld [vmem:[#allocation2 + $0x68] sm:$0xff] }
  0xbf   :  { %944 = vmatmul.mubr.f32.vlgmr.msra.gmra.mxu1 %v124_v13  ;;  %1790 = vmatpush3.msra.mxu0 %v345_v14  ;;  %v362_v12 = vld [vmem:[#allocation5 + $0x700] sm:$0xff]  ;;  %v129_v14 = vld [vmem:[#allocation2 + $0x78] sm:$0xff] }
  0xc0   :  { %1825 = vmatpush3.msra.mxu1 %v377_v15  ;;  %1791 = vmatprep.subr.mxu0 %v360_v16  ;;  %v126_v13 = vld [vmem:[#allocation2 + $0x60] sm:$0xff]  ;;  %v425_v15 = vld [vmem:[#allocation5 + $0x8f8] sm:$0xff] }
  0xc1   :  { %1826 = vmatprep.subr.mxu1 %v392_v17  ;;  %1792 = vmatpush3.msra.mxu0 %v344_v18  ;;  %v457_v16 = vld [vmem:[#allocation5 + $0x9f8] sm:$0xff]  ;;  %v128_v17 = vld [vmem:[#allocation2 + $0x70] sm:$0xff] }
  0xc2   :  { %1827 = vmatpush3.msra.mxu1 %v376_v19  ;;  %1793 = vmatprep.subr.mxu0 %v359_v20  ;;  %v409_v18 = vld [vmem:[#allocation5 + $0x878] sm:$0xff]  ;;  %v424_v20 = vld [vmem:[#allocation5 + $0x8f0] sm:$0xff] }
  0xc3   :  { %1828 = vmatprep.subr.mxu1 %v391_v21  ;;  %1794 = vmatpush3.msra.mxu0 %v343_v22  ;;  %v441_v19 = vld [vmem:[#allocation5 + $0x978] sm:$0xff]  ;;  %v456_v21 = vld [vmem:[#allocation5 + $0x9f0] sm:$0xff] }
  0xc4   :  { %1829 = vmatpush3.msra.mxu1 %v375_v23  ;;  %1795 = vmatprep.subr.mxu0 %v358_v24  ;;  %v408_v22 = vld [vmem:[#allocation5 + $0x870] sm:$0xff]  ;;  %v423_v24 = vld [vmem:[#allocation5 + $0x8e8] sm:$0xff] }
  0xc5   :  { %1830 = vmatprep.subr.mxu1 %v390_v25  ;;  %1796 = vmatpush3.msra.mxu0 %v342_v26  ;;  %v440_v23 = vld [vmem:[#allocation5 + $0x970] sm:$0xff]  ;;  %v455_v25 = vld [vmem:[#allocation5 + $0x9e8] sm:$0xff] }
  0xc6   :  { %1831 = vmatpush3.msra.mxu1 %v374_v27  ;;  %1797 = vmatprep.subr.mxu0 %v357_v28  ;;  %v407_v26 = vld [vmem:[#allocation5 + $0x868] sm:$0xff]  ;;  %v422_v28 = vld [vmem:[#allocation5 + $0x8e0] sm:$0xff] }
  0xc7   :  { %1832 = vmatprep.subr.mxu1 %v389_v29  ;;  %1798 = vmatpush3.msra.mxu0 %v341_v30  ;;  %v439_v27 = vld [vmem:[#allocation5 + $0x968] sm:$0xff]  ;;  %v454_v29 = vld [vmem:[#allocation5 + $0x9e0] sm:$0xff] }
  0xc8   :  { %1833 = vmatpush3.msra.mxu1 %v373_v31  ;;  %1799 = vmatprep.subr.mxu0 %v356_v32  ;;  %v406_v30 = vld [vmem:[#allocation5 + $0x860] sm:$0xff]  ;;  %v421_v32 = vld [vmem:[#allocation5 + $0x8d8] sm:$0xff] }
  0xc9   :  { %1834 = vmatprep.subr.mxu1 %v388_v33  ;;  %1800 = vmatpush3.msra.mxu0 %v340_v34  ;;  %v438_v31 = vld [vmem:[#allocation5 + $0x960] sm:$0xff]  ;;  %v453_v33 = vld [vmem:[#allocation5 + $0x9d8] sm:$0xff] }
  0xca   :  { %1835 = vmatpush3.msra.mxu1 %v372_v35  ;;  %1801 = vmatprep.subr.mxu0 %v355_v36  ;;  %v405_v34 = vld [vmem:[#allocation5 + $0x858] sm:$0xff]  ;;  %v420_v36 = vld [vmem:[#allocation5 + $0x8d0] sm:$0xff] }
  0xcb   :  { %1836 = vmatprep.subr.mxu1 %v387_v37  ;;  %1802 = vmatpush3.msra.mxu0 %v339_v38  ;;  %v437_v35 = vld [vmem:[#allocation5 + $0x958] sm:$0xff]  ;;  %v452_v37 = vld [vmem:[#allocation5 + $0x9d0] sm:$0xff] }
  0xcc   :  { %1837 = vmatpush3.msra.mxu1 %v371_v39  ;;  %1803 = vmatprep.subr.mxu0 %v354_v40  ;;  %v404_v38 = vld [vmem:[#allocation5 + $0x850] sm:$0xff]  ;;  %v419_v40 = vld [vmem:[#allocation5 + $0x8c8] sm:$0xff] }
  0xcd   :  { %1838 = vmatprep.subr.mxu1 %v386_v41  ;;  %1804 = vmatpush3.msra.mxu0 %v338_v42  ;;  %v436_v39 = vld [vmem:[#allocation5 + $0x950] sm:$0xff]  ;;  %v451_v41 = vld [vmem:[#allocation5 + $0x9c8] sm:$0xff] }
  0xce   :  { %1839 = vmatpush3.msra.mxu1 %v370_v43  ;;  %1805 = vmatprep.subr.mxu0 %v353_v44  ;;  %v403_v42 = vld [vmem:[#allocation5 + $0x848] sm:$0xff]  ;;  %v418_v44 = vld [vmem:[#allocation5 + $0x8c0] sm:$0xff] }
  0xcf   :  { %1840 = vmatprep.subr.mxu1 %v385_v45  ;;  %1806 = vmatpush3.msra.mxu0 %v337_v46  ;;  %v435_v43 = vld [vmem:[#allocation5 + $0x948] sm:$0xff]  ;;  %v450_v45 = vld [vmem:[#allocation5 + $0x9c0] sm:$0xff] }
  0xd0   :  { %1841 = vmatpush3.msra.mxu1 %v369_v47  ;;  %1807 = vmatprep.subr.mxu0 %v352_v48  ;;  %v402_v46 = vld [vmem:[#allocation5 + $0x840] sm:$0xff]  ;;  %v417_v48 = vld [vmem:[#allocation5 + $0x8b8] sm:$0xff] }
  0xd1   :  { %1842 = vmatprep.subr.mxu1 %v384_v49  ;;  %1808 = vmatpush3.msra.mxu0 %v336_v50  ;;  %v434_v47 = vld [vmem:[#allocation5 + $0x940] sm:$0xff]  ;;  %v449_v49 = vld [vmem:[#allocation5 + $0x9b8] sm:$0xff] }
  0xd2   :  { %1843 = vmatpush3.msra.mxu1 %v368_v51  ;;  %1809 = vmatprep.subr.mxu0 %v351_v52  ;;  %v401_v50 = vld [vmem:[#allocation5 + $0x838] sm:$0xff]  ;;  %v416_v52 = vld [vmem:[#allocation5 + $0x8b0] sm:$0xff] }
  0xd3   :  { %1844 = vmatprep.subr.mxu1 %v383_v53  ;;  %1810 = vmatpush3.msra.mxu0 %v335_v54  ;;  %v433_v51 = vld [vmem:[#allocation5 + $0x938] sm:$0xff]  ;;  %v448_v53 = vld [vmem:[#allocation5 + $0x9b0] sm:$0xff] }
  0xd4   :  { %1845 = vmatpush3.msra.mxu1 %v367_v55  ;;  %1811 = vmatprep.subr.mxu0 %v350_v56  ;;  %v400_v54 = vld [vmem:[#allocation5 + $0x830] sm:$0xff]  ;;  %v415_v56 = vld [vmem:[#allocation5 + $0x8a8] sm:$0xff] }
  0xd5   :  { %1846 = vmatprep.subr.mxu1 %v382_v57  ;;  %1812 = vmatpush3.msra.mxu0 %v334_v58  ;;  %v432_v55 = vld [vmem:[#allocation5 + $0x930] sm:$0xff]  ;;  %v447_v57 = vld [vmem:[#allocation5 + $0x9a8] sm:$0xff] }
  0xd6   :  { %1847 = vmatpush3.msra.mxu1 %v366_v59  ;;  %1813 = vmatprep.subr.mxu0 %v349_v60  ;;  %v399_v58 = vld [vmem:[#allocation5 + $0x828] sm:$0xff]  ;;  %v414_v60 = vld [vmem:[#allocation5 + $0x8a0] sm:$0xff] }
  0xd7   :  { %1848 = vmatprep.subr.mxu1 %v381_v61  ;;  %1814 = vmatpush3.msra.mxu0 %v333_v62  ;;  %v431_v59 = vld [vmem:[#allocation5 + $0x928] sm:$0xff]  ;;  %v446_v61 = vld [vmem:[#allocation5 + $0x9a0] sm:$0xff] }
  0xd8   :  { %1849 = vmatpush3.msra.mxu1 %v365_v63  ;;  %1815 = vmatprep.subr.mxu0 %v348_v0  ;;  %v398_v62 = vld [vmem:[#allocation5 + $0x820] sm:$0xff]  ;;  %v413_v0 = vld [vmem:[#allocation5 + $0x898] sm:$0xff] }
  0xd9   :  { %1850 = vmatprep.subr.mxu1 %v380_v1  ;;  %1816 = vmatpush3.msra.mxu0 %v332_v2  ;;  %v430_v63 = vld [vmem:[#allocation5 + $0x920] sm:$0xff]  ;;  %v445_v1 = vld [vmem:[#allocation5 + $0x998] sm:$0xff] }
  0xda   :  { %1851 = vmatpush3.msra.mxu1 %v364_v3  ;;  %1817 = vmatprep.subr.mxu0 %v347_v4  ;;  %v397_v2 = vld [vmem:[#allocation5 + $0x818] sm:$0xff]  ;;  %v412_v4 = vld [vmem:[#allocation5 + $0x890] sm:$0xff] }
  0xdb   :  { %1852 = vmatprep.subr.mxu1 %v379_v5  ;;  %1818 = vmatpush3.msra.mxu0 %v331_v6  ;;  %v429_v3 = vld [vmem:[#allocation5 + $0x918] sm:$0xff]  ;;  %v444_v5 = vld [vmem:[#allocation5 + $0x990] sm:$0xff] }
  0xdc   :  { %1853 = vmatpush3.msra.mxu1 %v363_v7  ;;  %1819 = vmatprep.subr.mxu0 %v346_v8  ;;  %v396_v6 = vld [vmem:[#allocation5 + $0x810] sm:$0xff]  ;;  %v411_v8 = vld [vmem:[#allocation5 + $0x888] sm:$0xff] }
  0xdd   :  { %1854 = vmatprep.subr.mxu1 %v378_v9  ;;  %1820 = vmatpush3.msra.mxu0 %v330_v10  ;;  %v428_v7 = vld [vmem:[#allocation5 + $0x910] sm:$0xff]  ;;  %v443_v9 = vld [vmem:[#allocation5 + $0x988] sm:$0xff] }
  0xde   :  { %1013 = vmatprep.mubr.f32.mxu0 %v127_v11  ;;  %1855 = vmatpush3.msra.mxu1 %v362_v12  ;;  %v395_v10 = vld [vmem:[#allocation5 + $0x808] sm:$0xff]  ;;  %v410_v12 = vld [vmem:[#allocation5 + $0x880] sm:$0xff] }
  0xdf   :  { %1014 = vmatmul.mubr.f32.vlgmr.msra.gmra.mxu0 %v126_v13  ;;  %1083 = vmatprep.mubr.f32.mxu1 %v129_v14  ;;  %v427_v11 = vld [vmem:[#allocation5 + $0x908] sm:$0xff]  ;;  %v442_v13 = vld [vmem:[#allocation5 + $0x980] sm:$0xff] }
  0xe0   :  { %1859 = vmatprep.subr.mxu0 %v425_v15  ;;  %1894 = vmatprep.subr.mxu1 %v457_v16  ;;  %v394_v14 = vld [vmem:[#allocation5 + $0x800] sm:$0xff]  ;;  %v131_v15 = vld [vmem:[#allocation2 + $0x88] sm:$0xff] }
  0xe1   :  { %1084 = vmatmul.mubr.f32.vlgmr.msra.gmra.mxu1 %v128_v17  ;;  %1860 = vmatpush3.msra.mxu0 %v409_v18  ;;  %v426_v16 = vld [vmem:[#allocation5 + $0x900] sm:$0xff]  ;;  %v133_v18 = vld [vmem:[#allocation2 + $0x98] sm:$0xff] }
  0xe2   :  { %1895 = vmatpush3.msra.mxu1 %v441_v19  ;;  %1861 = vmatprep.subr.mxu0 %v424_v20  ;;  %v130_v17 = vld [vmem:[#allocation2 + $0x80] sm:$0xff]  ;;  %v489_v19 = vld [vmem:[#allocation5 + $0xaf8] sm:$0xff] }
  0xe3   :  { %1896 = vmatprep.subr.mxu1 %v456_v21  ;;  %1862 = vmatpush3.msra.mxu0 %v408_v22  ;;  %v521_v20 = vld [vmem:[#allocation5 + $0xbf8] sm:$0xff]  ;;  %v132_v21 = vld [vmem:[#allocation2 + $0x90] sm:$0xff] }
  0xe4   :  { %1897 = vmatpush3.msra.mxu1 %v440_v23  ;;  %1863 = vmatprep.subr.mxu0 %v423_v24  ;;  %v473_v22 = vld [vmem:[#allocation5 + $0xa78] sm:$0xff]  ;;  %v488_v24 = vld [vmem:[#allocation5 + $0xaf0] sm:$0xff] }
  0xe5   :  { %1898 = vmatprep.subr.mxu1 %v455_v25  ;;  %1864 = vmatpush3.msra.mxu0 %v407_v26  ;;  %v505_v23 = vld [vmem:[#allocation5 + $0xb78] sm:$0xff]  ;;  %v520_v25 = vld [vmem:[#allocation5 + $0xbf0] sm:$0xff] }
  0xe6   :  { %1899 = vmatpush3.msra.mxu1 %v439_v27  ;;  %1865 = vmatprep.subr.mxu0 %v422_v28  ;;  %v472_v26 = vld [vmem:[#allocation5 + $0xa70] sm:$0xff]  ;;  %v487_v28 = vld [vmem:[#allocation5 + $0xae8] sm:$0xff] }
  0xe7   :  { %1900 = vmatprep.subr.mxu1 %v454_v29  ;;  %1866 = vmatpush3.msra.mxu0 %v406_v30  ;;  %v504_v27 = vld [vmem:[#allocation5 + $0xb70] sm:$0xff]  ;;  %v519_v29 = vld [vmem:[#allocation5 + $0xbe8] sm:$0xff] }
  0xe8   :  { %1901 = vmatpush3.msra.mxu1 %v438_v31  ;;  %1867 = vmatprep.subr.mxu0 %v421_v32  ;;  %v471_v30 = vld [vmem:[#allocation5 + $0xa68] sm:$0xff]  ;;  %v486_v32 = vld [vmem:[#allocation5 + $0xae0] sm:$0xff] }
  0xe9   :  { %1902 = vmatprep.subr.mxu1 %v453_v33  ;;  %1868 = vmatpush3.msra.mxu0 %v405_v34  ;;  %v503_v31 = vld [vmem:[#allocation5 + $0xb68] sm:$0xff]  ;;  %v518_v33 = vld [vmem:[#allocation5 + $0xbe0] sm:$0xff] }
  0xea   :  { %1903 = vmatpush3.msra.mxu1 %v437_v35  ;;  %1869 = vmatprep.subr.mxu0 %v420_v36  ;;  %v470_v34 = vld [vmem:[#allocation5 + $0xa60] sm:$0xff]  ;;  %v485_v36 = vld [vmem:[#allocation5 + $0xad8] sm:$0xff] }
  0xeb   :  { %1904 = vmatprep.subr.mxu1 %v452_v37  ;;  %1870 = vmatpush3.msra.mxu0 %v404_v38  ;;  %v502_v35 = vld [vmem:[#allocation5 + $0xb60] sm:$0xff]  ;;  %v517_v37 = vld [vmem:[#allocation5 + $0xbd8] sm:$0xff] }
  0xec   :  { %1905 = vmatpush3.msra.mxu1 %v436_v39  ;;  %1871 = vmatprep.subr.mxu0 %v419_v40  ;;  %v469_v38 = vld [vmem:[#allocation5 + $0xa58] sm:$0xff]  ;;  %v484_v40 = vld [vmem:[#allocation5 + $0xad0] sm:$0xff] }
  0xed   :  { %1906 = vmatprep.subr.mxu1 %v451_v41  ;;  %1872 = vmatpush3.msra.mxu0 %v403_v42  ;;  %v501_v39 = vld [vmem:[#allocation5 + $0xb58] sm:$0xff]  ;;  %v516_v41 = vld [vmem:[#allocation5 + $0xbd0] sm:$0xff] }
  0xee   :  { %1907 = vmatpush3.msra.mxu1 %v435_v43  ;;  %1873 = vmatprep.subr.mxu0 %v418_v44  ;;  %v468_v42 = vld [vmem:[#allocation5 + $0xa50] sm:$0xff]  ;;  %v483_v44 = vld [vmem:[#allocation5 + $0xac8] sm:$0xff] }
  0xef   :  { %1908 = vmatprep.subr.mxu1 %v450_v45  ;;  %1874 = vmatpush3.msra.mxu0 %v402_v46  ;;  %v500_v43 = vld [vmem:[#allocation5 + $0xb50] sm:$0xff]  ;;  %v515_v45 = vld [vmem:[#allocation5 + $0xbc8] sm:$0xff] }
  0xf0   :  { %1909 = vmatpush3.msra.mxu1 %v434_v47  ;;  %1875 = vmatprep.subr.mxu0 %v417_v48  ;;  %v467_v46 = vld [vmem:[#allocation5 + $0xa48] sm:$0xff]  ;;  %v482_v48 = vld [vmem:[#allocation5 + $0xac0] sm:$0xff] }
  0xf1   :  { %1910 = vmatprep.subr.mxu1 %v449_v49  ;;  %1876 = vmatpush3.msra.mxu0 %v401_v50  ;;  %v499_v47 = vld [vmem:[#allocation5 + $0xb48] sm:$0xff]  ;;  %v514_v49 = vld [vmem:[#allocation5 + $0xbc0] sm:$0xff] }
  0xf2   :  { %1911 = vmatpush3.msra.mxu1 %v433_v51  ;;  %1877 = vmatprep.subr.mxu0 %v416_v52  ;;  %v466_v50 = vld [vmem:[#allocation5 + $0xa40] sm:$0xff]  ;;  %v481_v52 = vld [vmem:[#allocation5 + $0xab8] sm:$0xff] }
  0xf3   :  { %1912 = vmatprep.subr.mxu1 %v448_v53  ;;  %1878 = vmatpush3.msra.mxu0 %v400_v54  ;;  %v498_v51 = vld [vmem:[#allocation5 + $0xb40] sm:$0xff]  ;;  %v513_v53 = vld [vmem:[#allocation5 + $0xbb8] sm:$0xff] }
  0xf4   :  { %1913 = vmatpush3.msra.mxu1 %v432_v55  ;;  %1879 = vmatprep.subr.mxu0 %v415_v56  ;;  %v465_v54 = vld [vmem:[#allocation5 + $0xa38] sm:$0xff]  ;;  %v480_v56 = vld [vmem:[#allocation5 + $0xab0] sm:$0xff] }
  0xf5   :  { %1914 = vmatprep.subr.mxu1 %v447_v57  ;;  %1880 = vmatpush3.msra.mxu0 %v399_v58  ;;  %v497_v55 = vld [vmem:[#allocation5 + $0xb38] sm:$0xff]  ;;  %v512_v57 = vld [vmem:[#allocation5 + $0xbb0] sm:$0xff] }
  0xf6   :  { %1915 = vmatpush3.msra.mxu1 %v431_v59  ;;  %1881 = vmatprep.subr.mxu0 %v414_v60  ;;  %v464_v58 = vld [vmem:[#allocation5 + $0xa30] sm:$0xff]  ;;  %v479_v60 = vld [vmem:[#allocation5 + $0xaa8] sm:$0xff] }
  0xf7   :  { %1916 = vmatprep.subr.mxu1 %v446_v61  ;;  %1882 = vmatpush3.msra.mxu0 %v398_v62  ;;  %v496_v59 = vld [vmem:[#allocation5 + $0xb30] sm:$0xff]  ;;  %v511_v61 = vld [vmem:[#allocation5 + $0xba8] sm:$0xff] }
  0xf8   :  { %1917 = vmatpush3.msra.mxu1 %v430_v63  ;;  %1883 = vmatprep.subr.mxu0 %v413_v0  ;;  %v463_v62 = vld [vmem:[#allocation5 + $0xa28] sm:$0xff]  ;;  %v478_v0 = vld [vmem:[#allocation5 + $0xaa0] sm:$0xff] }
  0xf9   :  { %1918 = vmatprep.subr.mxu1 %v445_v1  ;;  %1884 = vmatpush3.msra.mxu0 %v397_v2  ;;  %v495_v63 = vld [vmem:[#allocation5 + $0xb28] sm:$0xff]  ;;  %v510_v1 = vld [vmem:[#allocation5 + $0xba0] sm:$0xff] }
  0xfa   :  { %1919 = vmatpush3.msra.mxu1 %v429_v3  ;;  %1885 = vmatprep.subr.mxu0 %v412_v4  ;;  %v462_v2 = vld [vmem:[#allocation5 + $0xa20] sm:$0xff]  ;;  %v477_v4 = vld [vmem:[#allocation5 + $0xa98] sm:$0xff] }
  0xfb   :  { %1920 = vmatprep.subr.mxu1 %v444_v5  ;;  %1886 = vmatpush3.msra.mxu0 %v396_v6  ;;  %v494_v3 = vld [vmem:[#allocation5 + $0xb20] sm:$0xff]  ;;  %v509_v5 = vld [vmem:[#allocation5 + $0xb98] sm:$0xff] }
  0xfc   :  { %1921 = vmatpush3.msra.mxu1 %v428_v7  ;;  %1887 = vmatprep.subr.mxu0 %v411_v8  ;;  %v461_v6 = vld [vmem:[#allocation5 + $0xa18] sm:$0xff]  ;;  %v476_v8 = vld [vmem:[#allocation5 + $0xa90] sm:$0xff] }
  0xfd   :  { %1922 = vmatprep.subr.mxu1 %v443_v9  ;;  %1888 = vmatpush3.msra.mxu0 %v395_v10  ;;  %v493_v7 = vld [vmem:[#allocation5 + $0xb18] sm:$0xff]  ;;  %v508_v9 = vld [vmem:[#allocation5 + $0xb90] sm:$0xff] }
  0xfe   :  { %1923 = vmatpush3.msra.mxu1 %v427_v11  ;;  %1889 = vmatprep.subr.mxu0 %v410_v12  ;;  %v460_v10 = vld [vmem:[#allocation5 + $0xa10] sm:$0xff]  ;;  %v475_v12 = vld [vmem:[#allocation5 + $0xa88] sm:$0xff] }
  0xff   :  { %1924 = vmatprep.subr.mxu1 %v442_v13  ;;  %1890 = vmatpush3.msra.mxu0 %v394_v14  ;;  %v492_v11 = vld [vmem:[#allocation5 + $0xb10] sm:$0xff]  ;;  %v507_v13 = vld [vmem:[#allocation5 + $0xb88] sm:$0xff] }
 0x100   :  { %1153 = vmatprep.mubr.f32.mxu0 %v131_v15  ;;  %1925 = vmatpush3.msra.mxu1 %v426_v16  ;;  %v459_v14 = vld [vmem:[#allocation5 + $0xa08] sm:$0xff]  ;;  %v474_v16 = vld [vmem:[#allocation5 + $0xa80] sm:$0xff] }
 0x101   :  { %1154 = vmatmul.mubr.f32.vlgmr.msra.gmra.mxu0 %v130_v17  ;;  %1223 = vmatprep.mubr.f32.mxu1 %v133_v18  ;;  %v491_v15 = vld [vmem:[#allocation5 + $0xb08] sm:$0xff]  ;;  %v506_v17 = vld [vmem:[#allocation5 + $0xb80] sm:$0xff] }
 0x102   :  { %1929 = vmatprep.subr.mxu0 %v489_v19  ;;  %1964 = vmatprep.subr.mxu1 %v521_v20  ;;  %v458_v18 = vld [vmem:[#allocation5 + $0xa00] sm:$0xff]  ;;  %v135_v19 = vld [vmem:[#allocation2 + $0xa8] sm:$0xff] }
 0x103   :  { %1224 = vmatmul.mubr.f32.vlgmr.msra.gmra.mxu1 %v132_v21  ;;  %1930 = vmatpush3.msra.mxu0 %v473_v22  ;;  %v490_v20 = vld [vmem:[#allocation5 + $0xb00] sm:$0xff]  ;;  %v137_v21 = vld [vmem:[#allocation2 + $0xb8] sm:$0xff] }
 0x104   :  { %1965 = vmatpush3.msra.mxu1 %v505_v23  ;;  %1931 = vmatprep.subr.mxu0 %v488_v24  ;;  %v134_v22 = vld [vmem:[#allocation2 + $0xa0] sm:$0xff]  ;;  %v136_v23 = vld [vmem:[#allocation2 + $0xb0] sm:$0xff] }
 0x105   :  { %1966 = vmatprep.subr.mxu1 %v520_v25  ;;  %1932 = vmatpush3.msra.mxu0 %v472_v26  ;;  %v1385_v24 = vld [vmem:[#allocation8 + $0x78] sm:$0xff]  ;;  %v2294_v25 = vmov 0.0   ;;  %v1384_v26 = vld [vmem:[#allocation8 + $0x70] sm:$0xff] }
 0x106   :  { %1967 = vmatpush3.msra.mxu1 %v504_v27  ;;  %1933 = vmatprep.subr.mxu0 %v487_v28  ;;  %v1383_v27 = vld [vmem:[#allocation8 + $0x68] sm:$0xff]  ;;  %v1382_v28 = vld [vmem:[#allocation8 + $0x60] sm:$0xff] }
 0x107   :  { %1968 = vmatprep.subr.mxu1 %v519_v29  ;;  %1934 = vmatpush3.msra.mxu0 %v471_v30  ;;  %v1381_v29 = vld [vmem:[#allocation8 + $0x58] sm:$0xff]  ;;  %v1380_v30 = vld [vmem:[#allocation8 + $0x50] sm:$0xff] }
 0x108   :  { %1969 = vmatpush3.msra.mxu1 %v503_v31  ;;  %1935 = vmatprep.subr.mxu0 %v486_v32  ;;  %v1379_v31 = vld [vmem:[#allocation8 + $0x48] sm:$0xff]  ;;  %v1378_v32 = vld [vmem:[#allocation8 + $0x40] sm:$0xff] }
 0x109   :  { %1970 = vmatprep.subr.mxu1 %v518_v33  ;;  %1936 = vmatpush3.msra.mxu0 %v470_v34  ;;  %v1377_v33 = vld [vmem:[#allocation8 + $0x38] sm:$0xff]  ;;  %v1376_v34 = vld [vmem:[#allocation8 + $0x30] sm:$0xff] }
 0x10a   :  { %1971 = vmatpush3.msra.mxu1 %v502_v35  ;;  %1937 = vmatprep.subr.mxu0 %v485_v36  ;;  %v1375_v35 = vld [vmem:[#allocation8 + $0x28] sm:$0xff]  ;;  %v1374_v36 = vld [vmem:[#allocation8 + $0x20] sm:$0xff] }
 0x10b   :  { %1972 = vmatprep.subr.mxu1 %v517_v37  ;;  %1938 = vmatpush3.msra.mxu0 %v469_v38  ;;  %v1373_v37 = vld [vmem:[#allocation8 + $0x18] sm:$0xff]  ;;  %v1372_v38 = vld [vmem:[#allocation8 + $0x10] sm:$0xff] }
 0x10c   :  { %1973 = vmatpush3.msra.mxu1 %v501_v39  ;;  %1939 = vmatprep.subr.mxu0 %v484_v40  ;;  %v1371_v39 = vld [vmem:[#allocation8 + $0x8] sm:$0xff]  ;;  %v1370_v40 = vld [vmem:[#allocation8] sm:$0xff] }
 0x10d   :  { %1974 = vmatprep.subr.mxu1 %v516_v41  ;;  %1940 = vmatpush3.msra.mxu0 %v468_v42  ;;  %v1479_v41 = vld [vmem:[#allocation11 + $0x78] sm:$0xff]  ;;  %v1478_v42 = vld [vmem:[#allocation11 + $0x70] sm:$0xff] }
 0x10e   :  { %1975 = vmatpush3.msra.mxu1 %v500_v43  ;;  %1941 = vmatprep.subr.mxu0 %v483_v44  ;;  %v1477_v43 = vld [vmem:[#allocation11 + $0x68] sm:$0xff]  ;;  %v1476_v44 = vld [vmem:[#allocation11 + $0x60] sm:$0xff] }
 0x10f   :  { %1976 = vmatprep.subr.mxu1 %v515_v45  ;;  %1942 = vmatpush3.msra.mxu0 %v467_v46  ;;  %v1475_v45 = vld [vmem:[#allocation11 + $0x58] sm:$0xff]  ;;  %v1474_v46 = vld [vmem:[#allocation11 + $0x50] sm:$0xff] }
 0x110   :  { %1977 = vmatpush3.msra.mxu1 %v499_v47  ;;  %1943 = vmatprep.subr.mxu0 %v482_v48  ;;  %v1473_v47 = vld [vmem:[#allocation11 + $0x48] sm:$0xff]  ;;  %v1472_v48 = vld [vmem:[#allocation11 + $0x40] sm:$0xff] }
 0x111   :  { %1978 = vmatprep.subr.mxu1 %v514_v49  ;;  %1944 = vmatpush3.msra.mxu0 %v466_v50  ;;  %v1471_v49 = vld [vmem:[#allocation11 + $0x38] sm:$0xff]  ;;  %v1470_v50 = vld [vmem:[#allocation11 + $0x30] sm:$0xff] }
 0x112   :  { %1979 = vmatpush3.msra.mxu1 %v498_v51  ;;  %1945 = vmatprep.subr.mxu0 %v481_v52  ;;  %v1469_v51 = vld [vmem:[#allocation11 + $0x28] sm:$0xff]  ;;  %v1468_v52 = vld [vmem:[#allocation11 + $0x20] sm:$0xff] }
 0x113   :  { %1980 = vmatprep.subr.mxu1 %v513_v53  ;;  %1946 = vmatpush3.msra.mxu0 %v465_v54  ;;  %v1467_v53 = vld [vmem:[#allocation11 + $0x18] sm:$0xff] }
 0x114   :  { %1981 = vmatpush3.msra.mxu1 %v497_v55  ;;  %1947 = vmatprep.subr.mxu0 %v480_v56 }
 0x115   :  { %1982 = vmatprep.subr.mxu1 %v512_v57  ;;  %1948 = vmatpush3.msra.mxu0 %v464_v58 }
 0x116   :  { %1983 = vmatpush3.msra.mxu1 %v496_v59  ;;  %1949 = vmatprep.subr.mxu0 %v479_v60  ;;  %v1576_v59 = vld [vmem:[#allocation7] ss:$0 sm:$0xff] }
 0x117   :  { %1984 = vmatprep.subr.mxu1 %v511_v61  ;;  %1950 = vmatpush3.msra.mxu0 %v463_v62 }
 0x118   :  { %1985 = vmatpush3.msra.mxu1 %v495_v63  ;;  %1951 = vmatprep.subr.mxu0 %v478_v0 }
 0x119   :  { %1986 = vmatprep.subr.mxu1 %v510_v1  ;;  %1952 = vmatpush3.msra.mxu0 %v462_v2 }
 0x11a   :  { %1987 = vmatpush3.msra.mxu1 %v494_v3  ;;  %1953 = vmatprep.subr.mxu0 %v477_v4 }
 0x11b   :  { %1988 = vmatprep.subr.mxu1 %v509_v5  ;;  %1954 = vmatpush3.msra.mxu0 %v461_v6 }
 0x11c   :  { %1989 = vmatpush3.msra.mxu1 %v493_v7  ;;  %1955 = vmatprep.subr.mxu0 %v476_v8 }
 0x11d   :  { %1990 = vmatprep.subr.mxu1 %v508_v9  ;;  %1956 = vmatpush3.msra.mxu0 %v460_v10 }
 0x11e   :  { %1991 = vmatpush3.msra.mxu1 %v492_v11  ;;  %1957 = vmatprep.subr.mxu0 %v475_v12 }
 0x11f   :  { %1992 = vmatprep.subr.mxu1 %v507_v13  ;;  %1958 = vmatpush3.msra.mxu0 %v459_v14 }
 0x120   :  { %1993 = vmatpush3.msra.mxu1 %v491_v15  ;;  %1959 = vmatprep.subr.mxu0 %v474_v16 }
 0x121   :  { %1994 = vmatprep.subr.mxu1 %v506_v17  ;;  %1960 = vmatpush3.msra.mxu0 %v458_v18 }
 0x122   :  { %1293 = vmatprep.mubr.f32.mxu0 %v135_v19  ;;  %1995 = vmatpush3.msra.mxu1 %v490_v20 }
 0x123   :  { %1363 = vmatprep.mubr.f32.mxu1 %v137_v21  ;;  %1294 = vmatmul.mubr.f32.vlgmr.msra.gmra.mxu0 %v134_v22 }
 0x124   :  { %1364 = vmatmul.mubr.f32.vlgmr.msra.gmra.mxu1 %v136_v23  ;;  %2033 = vmatprep.subr.mxu0 %v2294_v25 }
 0x125   :  { %2068 = vmatprep.subr.mxu1 %v2294_v25  ;;  %2034 = vmatpush3.msra.mxu0 %v1385_v24 }
 0x126   :  { %2035 = vmatprep.subr.mxu0 %v2294_v25  ;;  %2065 = vmatprep.mubr.msk.f32.mxu0 %vm2295_vm0, %v2294_v25 }
 0x127   :  { %2036 = vmatpush3.msra.mxu0 %v1384_v26  ;;  %2100 = vmatprep.mubr.msk.f32.mxu1 %vm2295_vm0, %v2294_v25 }
 0x128   :  { %2037 = vmatprep.subr.mxu0 %v2294_v25  ;;  %2069 = vmatpush3.msra.mxu1 %v1479_v41  ;;  %v1466_v41 = vld [vmem:[#allocation11 + $0x10] sm:$0xff] }
 0x129   :  { %2038 = vmatpush3.msra.mxu0 %v1383_v27  ;;  %2070 = vmatprep.subr.mxu1 %v2294_v25 }
 0x12a   :  { %2039 = vmatprep.subr.mxu0 %v2294_v25  ;;  %2071 = vmatpush3.msra.mxu1 %v1478_v42  ;;  %v1465_v42 = vld [vmem:[#allocation11 + $0x8] sm:$0xff] }
 0x12b   :  { %2040 = vmatpush3.msra.mxu0 %v1382_v28  ;;  %2072 = vmatprep.subr.mxu1 %v2294_v25 }
 0x12c   :  { %2041 = vmatprep.subr.mxu0 %v2294_v25  ;;  %2073 = vmatpush3.msra.mxu1 %v1477_v43  ;;  %v1464_v43 = vld [vmem:[#allocation11] sm:$0xff] }
 0x12d   :  { %2042 = vmatpush3.msra.mxu0 %v1381_v29  ;;  %2074 = vmatprep.subr.mxu1 %v2294_v25 }
 0x12e   :  { %2043 = vmatprep.subr.mxu0 %v2294_v25  ;;  %2075 = vmatpush3.msra.mxu1 %v1476_v44  ;;  %v1577_v44 = vld [vmem:[#allocation10] ss:$0 sm:$0xff] }
 0x12f   :  { %2044 = vmatpush3.msra.mxu0 %v1380_v30  ;;  %2076 = vmatprep.subr.mxu1 %v2294_v25 }
 0x130   :  { %2045 = vmatprep.subr.mxu0 %v2294_v25  ;;  %2077 = vmatpush3.msra.mxu1 %v1475_v45 }
 0x131   :  { %2046 = vmatpush3.msra.mxu0 %v1379_v31  ;;  %2078 = vmatprep.subr.mxu1 %v2294_v25 }
 0x132   :  { %2047 = vmatprep.subr.mxu0 %v2294_v25  ;;  %2079 = vmatpush3.msra.mxu1 %v1474_v46 }
 0x133   :  { %2048 = vmatpush3.msra.mxu0 %v1378_v32  ;;  %2080 = vmatprep.subr.mxu1 %v2294_v25 }
 0x134   :  { %2049 = vmatprep.subr.mxu0 %v2294_v25  ;;  %2081 = vmatpush3.msra.mxu1 %v1473_v47 }
 0x135   :  { %2050 = vmatpush3.msra.mxu0 %v1377_v33  ;;  %2082 = vmatprep.subr.mxu1 %v2294_v25 }
 0x136   :  { %2051 = vmatprep.subr.mxu0 %v2294_v25  ;;  %2083 = vmatpush3.msra.mxu1 %v1472_v48 }
 0x137   :  { %2052 = vmatpush3.msra.mxu0 %v1376_v34  ;;  %2084 = vmatprep.subr.mxu1 %v2294_v25 }
 0x138   :  { %2053 = vmatprep.subr.mxu0 %v2294_v25  ;;  %2085 = vmatpush3.msra.mxu1 %v1471_v49  ;;  %v1578_v49 = vld [vmem:[#allocation13] ss:$0 sm:$0xff] }
 0x139   :  { %2054 = vmatpush3.msra.mxu0 %v1375_v35  ;;  %2086 = vmatprep.subr.mxu1 %v2294_v25  ;;  %v1611_v54 = vpop.f32.mrf.mxu0 }
 0x13a   :  { %2055 = vmatprep.subr.mxu0 %v2294_v25  ;;  %2087 = vmatpush3.msra.mxu1 %v1470_v50 }
 0x13b   :  { %2056 = vmatpush3.msra.mxu0 %v1374_v36  ;;  %2088 = vmatprep.subr.mxu1 %v2294_v25  ;;  %v1646_v55 = vpop.f32.mrf.mxu1  ;;  %v1612_v56 = vpop.f32.mrf.mxu0 }
 0x13c   :  { %2057 = vmatprep.subr.mxu0 %v2294_v25  ;;  %2089 = vmatpush3.msra.mxu1 %v1469_v51  ;;  %v1613_v58 = vadd.f32 %v1612_v56, %v1611_v54 }
 0x13d   :  { %2058 = vmatpush3.msra.mxu0 %v1373_v37  ;;  %2090 = vmatprep.subr.mxu1 %v2294_v25  ;;  %v1647_v60 = vpop.f32.mrf.mxu1 }
 0x13e   :  { %2059 = vmatprep.subr.mxu0 %v2294_v25  ;;  %2091 = vmatpush3.msra.mxu1 %v1468_v52  ;;  %v596_v63 = vadd.f32 %v1613_v58, %v1576_v59  ;;  %v1648_v0 = vadd.f32 %v1647_v60, %v1646_v55 }
 0x13f   :  { %2060 = vmatpush3.msra.mxu0 %v1372_v38  ;;  %2092 = vmatprep.subr.mxu1 %v2294_v25 }
 0x140   :  { %2061 = vmatprep.subr.mxu0 %v2294_v25  ;;  %2093 = vmatpush3.msra.mxu1 %v1467_v53  ;;  %v666_v4 = vadd.f32 %v1648_v0, %v596_v63 }
 0x141   :  { %2062 = vmatpush3.msra.mxu0 %v1371_v39  ;;  %2094 = vmatprep.subr.mxu1 %v2294_v25 }
 0x142   :  { %2063 = vmatprep.subr.mxu0 %v2294_v25  ;;  %2095 = vmatpush3.msra.mxu1 %v1466_v41 }
 0x143   :  { %2064 = vmatpush3.msra.mxu0 %v1370_v40  ;;  %2096 = vmatprep.subr.mxu1 %v2294_v25 }
 0x144   :  { %2097 = vmatpush3.msra.mxu1 %v1465_v42 }
 0x145   :  { %2098 = vmatprep.subr.mxu1 %v2294_v25 }
 0x146   :  { %2099 = vmatpush3.msra.mxu1 %v1464_v43 }
 0x15b   :  { %v1681_v57 = vpop.f32.mrf.mxu0 }
 0x15d   :  { %v1716_v61 = vpop.f32.mrf.mxu1  ;;  %v1682_v62 = vpop.f32.mrf.mxu0 }
 0x15e   :  { %v1683_v2 = vadd.f32 %v1682_v62, %v1681_v57 }
 0x15f   :  { %v1717_v3 = vpop.f32.mrf.mxu1 }
 0x160   :  { %v736_v7 = vadd.f32 %v1683_v2, %v666_v4  ;;  %v1718_v8 = vadd.f32 %v1717_v3, %v1716_v61 }
 0x162   :  { %v806_v12 = vadd.f32 %v1718_v8, %v736_v7 }
 0x17d   :  { %v1751_v1 = vpop.f32.mrf.mxu0 }
 0x17f   :  { %v1786_v5 = vpop.f32.mrf.mxu1  ;;  %v1752_v6 = vpop.f32.mrf.mxu0 }
 0x180   :  { %v1753_v10 = vadd.f32 %v1752_v6, %v1751_v1 }
 0x181   :  { %v1787_v11 = vpop.f32.mrf.mxu1 }
 0x182   :  { %v876_v15 = vadd.f32 %v1753_v10, %v806_v12  ;;  %v1788_v16 = vadd.f32 %v1787_v11, %v1786_v5 }
 0x184   :  { %v946_v20 = vadd.f32 %v1788_v16, %v876_v15 }
 0x19f   :  { %v1821_v9 = vpop.f32.mrf.mxu0 }
 0x1a1   :  { %v1856_v13 = vpop.f32.mrf.mxu1  ;;  %v1822_v14 = vpop.f32.mrf.mxu0 }
 0x1a2   :  { %v1823_v18 = vadd.f32 %v1822_v14, %v1821_v9 }
 0x1a3   :  { %v1857_v19 = vpop.f32.mrf.mxu1 }
 0x1a4   :  { %v1016_v23 = vadd.f32 %v1823_v18, %v946_v20  ;;  %v1858_v24 = vadd.f32 %v1857_v19, %v1856_v13 }
 0x1a6   :  { %v1086_v28 = vadd.f32 %v1858_v24, %v1016_v23 }
 0x1c1   :  { %v1891_v17 = vpop.f32.mrf.mxu0 }
 0x1c3   :  { %v1926_v21 = vpop.f32.mrf.mxu1  ;;  %v1892_v22 = vpop.f32.mrf.mxu0 }
 0x1c4   :  { %v1893_v26 = vadd.f32 %v1892_v22, %v1891_v17 }
 0x1c5   :  { %v1927_v27 = vpop.f32.mrf.mxu1 }
 0x1c6   :  { %v1156_v29 = vadd.f32 %v1893_v26, %v1086_v28  ;;  %v1928_v30 = vadd.f32 %v1927_v27, %v1926_v21 }
 0x1c8   :  { %v1226_v35 = vadd.f32 %v1928_v30, %v1156_v29 }
 0x1e3   :  { %v1961_v31 = vpop.f32.mrf.mxu0 }
 0x1e4   :  { %v1996_v32 = vpop.f32.mrf.mxu1 }
 0x1e5   :  { %v1962_v33 = vpop.f32.mrf.mxu0 }
 0x1e6   :  { %v1997_v34 = vpop.f32.mrf.mxu1  ;;  %v1963_v36 = vadd.f32 %v1962_v33, %v1961_v31 }
 0x1e7   :  { %v1998_v38 = vadd.f32 %v1997_v34, %v1996_v32 }
 0x1e8   :  { %v1296_v37 = vadd.f32 %v1963_v36, %v1226_v35 }
 0x1ea   :  { %v1366_v39 = vadd.f32 %v1998_v38, %v1296_v37 }
 0x1ec   :  { %v1369_v40 = vmax.f32 %v1366_v39, 0.0 }
 0x1ee   :  { %2066 = vmatmul.mubr.f32.vlgmr.msra.gmra.mxu0 %v1369_v40 }
 0x2ae   :  { %v1459_v45 = vpop.f32.mrf.mxu0 }
 0x2af   :  { %v1460_v46 = vadd.f32 %v1577_v44, %v1459_v45 }
 0x2b0   :  { %v2067_v47 = vpop.f32.mrf.mxu0 }
 0x2b1   :  { %v1463_v48 = vmax.f32 %v1460_v46, 0.0 }
 0x2b3   :  { %2101 = vmatmul.mubr.f32.vlgmr.msra.gmra.mxu1 %v1463_v48 }
 0x373   :  { %v1553_v50 = vpop.f32.mrf.mxu1 }
 0x374   :  { %v1554_v51 = vadd.f32 %v1578_v49, %v1553_v50 }
 0x375   :  { %v2102_v52 = vpop.f32.mrf.mxu1 }
 0x376   :  { %1557 = vst [vmem:[#allocation14] sm:$0xff] %v1554_v51 }
 0x377   :  { %2266 = shalt.err (!%p2263_p11)
}
 0x378   :  { %1567 = dma.vmem_to_hbm [thread:$0]  %s1565_s6, 128, %s2402_s7, [#allocation4]  }
 0x379   :  { %2283 = dma.done.wait [#allocation4], 128  }
 0x37a   :  { %2284 = vsyncadd [#allocation4], 4294967168 }
 0x37b   :  { %1571 = vsyncpa [#allocation3], 1 }
 0x37c   :  { %1572 = vsyncpa [#allocation6], 1 }
 0x37d   :  { %1573 = vsyncpa [#allocation9], 1 }
 0x37e   :  { %1574 = vsyncpa [#allocation12], 1 }
 0x37f   :  { %1575 = vsyncpa [#allocation4], 1 }

</bundles_post_ra>
